<compile_context>
chip_gen: v5e
topology: v5e:2x2
jax: 0.10.0
libtpu: 0.0.40
codegen_flags: <defaults>
</compile_context>

<pallas_src>
import math

import jax
import jax.numpy as jnp
from jax import lax
from jax.experimental import pallas as pl
from jax.experimental.pallas import tpu as pltpu

# ---- small synthetic BERT config (mirrors BertForMaskedLM structure) --------
VOCAB = 128          # multiple of 128 -> lane-dense logits stores (cf. 30522->30720)
HIDDEN = 32
N_LAYERS = 2
N_HEADS = 2
HEAD_DIM = HIDDEN // N_HEADS
INTERMEDIATE = 64
MAX_POS = 16
LN_EPS = 1e-12

# NOTE: at real BERT sizes, also tile the tied-decoder matmul over vocab and
# use pl.Buffered(1) on constant-index weight specs to cap VMEM (v7x = 64 MiB);
# at this toy size everything fits trivially.


# ------------------------------------------------------------------ helpers --
def _gelu(x):
    # TODO(synk): HF BERT uses exact erf-GELU; tanh approximation used here for
    # guaranteed Mosaic lowering.
    c = math.sqrt(2.0 / math.pi)
    return 0.5 * x * (1.0 + jnp.tanh(c * (x + 0.044715 * x * x * x)))


def _ln(x, g, b):
    mu = jnp.mean(x, axis=-1, keepdims=True)
    var = jnp.mean(jnp.square(x - mu), axis=-1, keepdims=True)
    return (x - mu) * lax.rsqrt(var + LN_EPS) * g + b


def _mm(x, w):
    # bf16 MXU inputs, f32 accumulation; elementwise math elsewhere stays f32.
    return jnp.dot(x.astype(jnp.bfloat16), w.astype(jnp.bfloat16),
                   preferred_element_type=jnp.float32)


# ------------------------------------------------------------------- kernel --
def _make_kernel(collect_hidden):
    def kernel(
        # per-batch inputs
        x0_ref, pos_ref, typ_ref, bias_ref, lab_ref,
        # embedding LN
        emb_g_ref, emb_b_ref,
        # per-layer (streamed) encoder weights
        qkv_w_ref, qkv_b_ref, ao_w_ref, ao_b_ref, aln_g_ref, aln_b_ref,
        fi_w_ref, fi_b_ref, fo_w_ref, fo_b_ref, fln_g_ref, fln_b_ref,
        # MLM head (constant-index, fetched once)
        tr_w_ref, tr_b_ref, trln_g_ref, trln_b_ref, dec_w_ref, dec_b_ref,
        # outputs (+ optional hidden-state outputs) + scratch
        logits_ref, loss_ref, *rest,
    ):
        if collect_hidden:
            emb_h_ref, lay_h_ref, x_sc = rest
        else:
            (x_sc,) = rest

        l = pl.program_id(1)
        S = x0_ref.shape[1]

        # --- embeddings: pos/type add + LayerNorm fused in-kernel (layer 0) ---
        @pl.when(l == 0)
        def _embed():
            xe = x0_ref[0] + pos_ref[...] + typ_ref[...]         # (S,H) f32
            xe = _ln(xe, emb_g_ref[...], emb_b_ref[...])
            x_sc[...] = xe
            if collect_hidden:
                emb_h_ref[0] = xe

        x = x_sc[...]                                            # residual stream (S,H)
        bias = bias_ref[0]                                       # (1,S) additive mask

        # --- encoder layer `l` (this layer's weights are streamed into VMEM) ---
        qkv = _mm(x, qkv_w_ref[0]) + qkv_b_ref[0]                # (S, 3H)
        ctx_heads = []
        # TODO(synk): at real head counts batch heads into one leading-batch
        # dot_general (head-leading (NH,S,Dh) blocks) instead of this loop.
        for h in range(N_HEADS):
            lo = h * HEAD_DIM
            qh = qkv[:, lo:lo + HEAD_DIM]                        # scale folded into W_q
            kh = qkv[:, HIDDEN + lo:HIDDEN + lo + HEAD_DIM]
            vh = qkv[:, 2 * HIDDEN + lo:2 * HIDDEN + lo + HEAD_DIM]

            s = lax.dot_general(qh.astype(jnp.bfloat16), kh.astype(jnp.bfloat16),
                                (((1,), (1,)), ((), ())),
                                preferred_element_type=jnp.float32) + bias
            s = s - jnp.max(s, axis=-1, keepdims=True)
            p = jnp.exp(s)
            p = p * pl.reciprocal(jnp.sum(p, axis=-1, keepdims=True), approx=True)

            ctx_heads.append(jnp.dot(p.astype(jnp.bfloat16), vh.astype(jnp.bfloat16),
                                     preferred_element_type=jnp.float32))  # (S, Dh)

        ctx = jnp.concatenate(ctx_heads, axis=-1)                # (S, H) merged heads
        attn = _mm(ctx, ao_w_ref[0]) + ao_b_ref[0]               # one (S,H)@(H,H) proj
        x = _ln(attn + x, aln_g_ref[0], aln_b_ref[0])            # residual + LN

        inter = _gelu(_mm(x, fi_w_ref[0]) + fi_b_ref[0])         # (S, I)
        ffn = _mm(inter, fo_w_ref[0]) + fo_b_ref[0]              # (S, H)
        x = _ln(ffn + x, fln_g_ref[0], fln_b_ref[0])
        x_sc[...] = x
        if collect_hidden:
            lay_h_ref[0, 0] = x

        # --- MLM head + per-sequence CE partials on the last layer step --------
        @pl.when(l == N_LAYERS - 1)
        def _head():
            hmid = _gelu(_mm(x, tr_w_ref[...]) + tr_b_ref[...])
            hmid = _ln(hmid, trln_g_ref[...], trln_b_ref[...])
            logits = lax.dot_general(hmid.astype(jnp.bfloat16),
                                     dec_w_ref[...].astype(jnp.bfloat16),   # (V,H) tied
                                     (((1,), (1,)), ((), ())),
                                     preferred_element_type=jnp.float32) + dec_b_ref[...]
            logits_ref[0] = logits                               # (S, V) lane-dense

            lab = lab_ref[0]                                     # (S,1) int32
            valid = (lab != -100).astype(jnp.float32)
            safe = jnp.where(lab == -100, 0, lab)
            m = jnp.max(logits, axis=-1, keepdims=True)
            z = logits - m
            lse = jnp.log(jnp.sum(jnp.exp(z), axis=-1, keepdims=True))
            vocab_iota = lax.broadcasted_iota(jnp.int32, (S, VOCAB), 1)
            tz = jnp.sum(jnp.where(vocab_iota == safe, z, 0.0), axis=-1, keepdims=True)
            parts = jnp.concatenate([(lse - tz) * valid, valid], axis=-1)   # (S, 2)
            loss_ref[0] = jnp.sum(parts, axis=0, keepdims=True)             # (1, 2)

    return kernel


# --------------------------------------------------------------- parameters --
def init_params(key):
    keys = jax.random.split(key, 8)
    it = iter(keys)

    def nrm(shape):
        return jax.random.normal(next(it), shape, jnp.float32) * 0.02

    MM = jnp.bfloat16  # matmul weights fed to the MXU in bf16
    qkv_w = nrm((N_LAYERS, HIDDEN, 3 * HIDDEN))
    # fold the 1/sqrt(head_dim) attention scale into the Q projection columns
    qkv_w = qkv_w.at[:, :, :HIDDEN].multiply(1.0 / math.sqrt(HEAD_DIM))

    return {
        # embeddings (word table kept f32: it is also the tied decoder weight)
        "word_emb": nrm((VOCAB, HIDDEN)),
        "pos_emb": nrm((MAX_POS, HIDDEN)),
        "type_emb": nrm((2, HIDDEN)),
        "emb_ln_g": jnp.ones((1, HIDDEN), jnp.float32),
        "emb_ln_b": jnp.zeros((1, HIDDEN), jnp.float32),
        # stacked encoder layer weights (leading axis = layer, streamed per step)
        "qkv_w": qkv_w.astype(MM),
        "qkv_b": jnp.zeros((N_LAYERS, 1, 3 * HIDDEN), jnp.float32),
        "ao_w": nrm((N_LAYERS, HIDDEN, HIDDEN)).astype(MM),
        "ao_b": jnp.zeros((N_LAYERS, 1, HIDDEN), jnp.float32),
        "attn_ln_g": jnp.ones((N_LAYERS, 1, HIDDEN), jnp.float32),
        "attn_ln_b": jnp.zeros((N_LAYERS, 1, HIDDEN), jnp.float32),
        "fi_w": nrm((N_LAYERS, HIDDEN, INTERMEDIATE)).astype(MM),
        "fi_b": jnp.zeros((N_LAYERS, 1, INTERMEDIATE), jnp.float32),
        "fo_w": nrm((N_LAYERS, INTERMEDIATE, HIDDEN)).astype(MM),
        "fo_b": jnp.zeros((N_LAYERS, 1, HIDDEN), jnp.float32),
        "ffn_ln_g": jnp.ones((N_LAYERS, 1, HIDDEN), jnp.float32),
        "ffn_ln_b": jnp.zeros((N_LAYERS, 1, HIDDEN), jnp.float32),
        # MLM head (cls.predictions.transform + tied decoder bias)
        "tr_w": nrm((HIDDEN, HIDDEN)).astype(MM),
        "tr_b": jnp.zeros((1, HIDDEN), jnp.float32),
        "tr_ln_g": jnp.ones((1, HIDDEN), jnp.float32),
        "tr_ln_b": jnp.zeros((1, HIDDEN), jnp.float32),
        "dec_b": jnp.zeros((1, VOCAB), jnp.float32),
    }


def _vmem_limit_bytes(params, S, collect_hidden):
    """Rough per-step working set (streamed layer weights double-buffered)."""
    per_layer = sum(int(params[k].nbytes) // N_LAYERS
                    for k in ("qkv_w", "qkv_b", "ao_w", "ao_b", "attn_ln_g", "attn_ln_b",
                              "fi_w", "fi_b", "fo_w", "fo_b", "ffn_ln_g", "ffn_ln_b"))
    resident = sum(int(params[k].nbytes)
                   for k in ("emb_ln_g", "emb_ln_b", "tr_w", "tr_b", "tr_ln_g",
                             "tr_ln_b", "word_emb", "dec_b"))
    io = (S * HIDDEN + 2 * S) * 4 + S * VOCAB * 4 + (S + 1) * HIDDEN * 4 + 8
    if collect_hidden:
        io += 2 * S * HIDDEN * 4
    scratch = S * HIDDEN * 4
    est = 2 * per_layer + 2 * resident + 2 * io + scratch
    return int(min(max(4 * est, 4 << 20), 48 << 20))


# ------------------------------------------------------------------ forward --
def bert_mlm_forward(params, input_ids, attention_mask=None, labels=None,
                     output_hidden_states=True):
    """Mirrors self.bert(input_ids, attention_mask, labels) of the PyTorch module."""
    B, S = input_ids.shape

    # --- word-embedding gather (glue); pos/type add + LN happen in the kernel ---
    # TODO(synk): move the gather in-kernel via scalar-prefetched ids + pl.Element.
    word = jnp.take(params["word_emb"], input_ids, axis=0)          # (B,S,H) f32
    pos = params["pos_emb"][:S]                                     # (S,H)
    typ = params["type_emb"][0:1]                                   # token_type_ids = 0

    # --- additive attention mask, kept tiny: (B,1,S) ---
    if attention_mask is None:
        attention_mask = jnp.ones((B, S), jnp.float32)
    bias = ((1.0 - attention_mask.astype(jnp.float32)) * -10000.0).reshape(B, 1, S)

    if labels is None:
        labels_arr = jnp.full((B, S, 1), -100, dtype=jnp.int32)
    else:
        labels_arr = labels.astype(jnp.int32).reshape(B, S, 1)

    per_batch = lambda b, l: (b, 0, 0)      # per-sequence blocks (constant over l)
    per_layer = lambda b, l: (l, 0, 0)      # streamed per-layer weight blocks
    c2 = lambda b, l: (0, 0)                # constant 2-D weights (fetched once)

    out_shapes = [jax.ShapeDtypeStruct((B, S, VOCAB), jnp.float32),
                  jax.ShapeDtypeStruct((B, 1, 2), jnp.float32)]
    out_specs = [pl.BlockSpec((1, S, VOCAB), per_batch),
                 pl.BlockSpec((1, 1, 2), per_batch)]
    if output_hidden_states:
        out_shapes += [jax.ShapeDtypeStruct((B, S, HIDDEN), jnp.float32),
                       jax.ShapeDtypeStruct((N_LAYERS, B, S, HIDDEN), jnp.float32)]
        out_specs += [pl.BlockSpec((1, S, HIDDEN), per_batch),
                      pl.BlockSpec((1, 1, S, HIDDEN), lambda b, l: (l, b, 0, 0))]

    in_specs = [
        pl.BlockSpec((1, S, HIDDEN), per_batch),                 # word embeds
        pl.BlockSpec((S, HIDDEN), c2),                           # pos_emb[:S]
        pl.BlockSpec((1, HIDDEN), c2),                           # type_emb[0]
        pl.BlockSpec((1, 1, S), per_batch),                      # mask bias
        pl.BlockSpec((1, S, 1), per_batch),                      # labels
        pl.BlockSpec((1, HIDDEN), c2),                           # emb_ln_g
        pl.BlockSpec((1, HIDDEN), c2),                           # emb_ln_b
        pl.BlockSpec((1, HIDDEN, 3 * HIDDEN), per_layer),        # qkv_w
        pl.BlockSpec((1, 1, 3 * HIDDEN), per_layer),             # qkv_b
        pl.BlockSpec((1, HIDDEN, HIDDEN), per_layer),            # ao_w
        pl.BlockSpec((1, 1, HIDDEN), per_layer),                 # ao_b
        pl.BlockSpec((1, 1, HIDDEN), per_layer),                 # attn_ln_g
        pl.BlockSpec((1, 1, HIDDEN), per_layer),                 # attn_ln_b
        pl.BlockSpec((1, HIDDEN, INTERMEDIATE), per_layer),      # fi_w
        pl.BlockSpec((1, 1, INTERMEDIATE), per_layer),           # fi_b
        pl.BlockSpec((1, INTERMEDIATE, HIDDEN), per_layer),      # fo_w
        pl.BlockSpec((1, 1, HIDDEN), per_layer),                 # fo_b
        pl.BlockSpec((1, 1, HIDDEN), per_layer),                 # ffn_ln_g
        pl.BlockSpec((1, 1, HIDDEN), per_layer),                 # ffn_ln_b
        pl.BlockSpec((HIDDEN, HIDDEN), c2),                      # tr_w
        pl.BlockSpec((1, HIDDEN), c2),                           # tr_b
        pl.BlockSpec((1, HIDDEN), c2),                           # tr_ln_g
        pl.BlockSpec((1, HIDDEN), c2),                           # tr_ln_b
        pl.BlockSpec((VOCAB, HIDDEN), c2),                       # tied decoder W
        pl.BlockSpec((1, VOCAB), c2),                            # dec_b
    ]

    outs = pl.pallas_call(
        _make_kernel(output_hidden_states),
        out_shape=tuple(out_shapes),
        grid=(B, N_LAYERS),
        in_specs=in_specs,
        out_specs=tuple(out_specs),
        scratch_shapes=[pltpu.VMEM((S, HIDDEN), jnp.float32)],   # residual stream
        compiler_params=pltpu.CompilerParams(
            dimension_semantics=("parallel", "arbitrary"),
            vmem_limit_bytes=_vmem_limit_bytes(params, S, output_hidden_states)),
    )(word, pos, typ, bias, labels_arr,
      params["emb_ln_g"], params["emb_ln_b"],
      params["qkv_w"], params["qkv_b"], params["ao_w"], params["ao_b"],
      params["attn_ln_g"], params["attn_ln_b"],
      params["fi_w"], params["fi_b"], params["fo_w"], params["fo_b"],
      params["ffn_ln_g"], params["ffn_ln_b"],
      params["tr_w"], params["tr_b"], params["tr_ln_g"], params["tr_ln_b"],
      params["word_emb"], params["dec_b"])

    logits, loss_parts = outs[0], outs[1]

    loss = None
    if labels is not None:
        # tiny reduction done in plain JAX (replaces the old finalize kernel);
        # NaN when no valid labels, matching torch CrossEntropyLoss.
        loss = jnp.sum(loss_parts[:, 0, 0]) / jnp.sum(loss_parts[:, 0, 1])

    hidden_states = None
    if output_hidden_states:
        emb_h, lay_h = outs[2], outs[3]
        hidden_states = (emb_h,) + tuple(lay_h[i] for i in range(N_LAYERS))

    return {"loss": loss, "logits": logits, "hidden_states": hidden_states}


# --------------------------------------------------------------------- main --
if __name__ == "__main__":
    params = init_params(jax.random.PRNGKey(0))

    B, S = 2, 8
    kid, klab = jax.random.split(jax.random.PRNGKey(0), 2)
    input_ids = jax.random.randint(kid, (B, S), 1, VOCAB, dtype=jnp.int32)
    attention_mask = jnp.ones((B, S), jnp.int32).at[1, -2:].set(0)
    labels = jax.random.randint(klab, (B, S), 1, VOCAB, dtype=jnp.int32)

    # full path (matches PyTorch: output_hidden_states=True)
    out = bert_mlm_forward(params, input_ids, attention_mask, labels)
    jax.block_until_ready((out["loss"], out["logits"], out["hidden_states"]))

    assert out["logits"].shape == (B, S, VOCAB)
    assert out["loss"].shape == ()
    assert len(out["hidden_states"]) == N_LAYERS + 1
    assert bool(jnp.isfinite(out["loss"]))

    # lean path (perf-review option): no hidden-state HBM writeback
    out2 = bert_mlm_forward(params, input_ids, attention_mask, labels,
                            output_hidden_states=False)
    jax.block_until_ready((out2["loss"], out2["logits"]))
    assert out2["hidden_states"] is None
    assert out2["logits"].shape == (B, S, VOCAB)

    print("KERNEL_OK")
</pallas_src>

<mosaic_0001>
module attributes {stable_mosaic.version = 11 : i64} {
  func.func @kernel(%arg0: i32, %arg1: i32, %arg2: memref<1x8x32xf32, #tpu.memory_space<vmem>>, %arg3: memref<8x32xf32, #tpu.memory_space<vmem>>, %arg4: memref<1x32xf32, #tpu.memory_space<vmem>>, %arg5: memref<1x1x8xf32, #tpu.memory_space<vmem>>, %arg6: memref<1x8x1xi32, #tpu.memory_space<vmem>>, %arg7: memref<1x32xf32, #tpu.memory_space<vmem>>, %arg8: memref<1x32xf32, #tpu.memory_space<vmem>>, %arg9: memref<1x32x96xbf16, #tpu.memory_space<vmem>>, %arg10: memref<1x1x96xf32, #tpu.memory_space<vmem>>, %arg11: memref<1x32x32xbf16, #tpu.memory_space<vmem>>, %arg12: memref<1x1x32xf32, #tpu.memory_space<vmem>>, %arg13: memref<1x1x32xf32, #tpu.memory_space<vmem>>, %arg14: memref<1x1x32xf32, #tpu.memory_space<vmem>>, %arg15: memref<1x32x64xbf16, #tpu.memory_space<vmem>>, %arg16: memref<1x1x64xf32, #tpu.memory_space<vmem>>, %arg17: memref<1x64x32xbf16, #tpu.memory_space<vmem>>, %arg18: memref<1x1x32xf32, #tpu.memory_space<vmem>>, %arg19: memref<1x1x32xf32, #tpu.memory_space<vmem>>, %arg20: memref<1x1x32xf32, #tpu.memory_space<vmem>>, %arg21: memref<32x32xbf16, #tpu.memory_space<vmem>>, %arg22: memref<1x32xf32, #tpu.memory_space<vmem>>, %arg23: memref<1x32xf32, #tpu.memory_space<vmem>>, %arg24: memref<1x32xf32, #tpu.memory_space<vmem>>, %arg25: memref<128x32xf32, #tpu.memory_space<vmem>>, %arg26: memref<1x128xf32, #tpu.memory_space<vmem>>, %arg27: memref<1x8x128xf32, #tpu.memory_space<vmem>>, %arg28: memref<1x1x2xf32, #tpu.memory_space<vmem>>, %arg29: memref<1x8x32xf32, #tpu.memory_space<vmem>>, %arg30: memref<1x1x8x32xf32, #tpu.memory_space<vmem>>, %arg31: memref<8x32xf32, #tpu.memory_space<vmem>>) attributes {dimension_semantics = [#tpu.dimension_semantics<parallel>, #tpu.dimension_semantics<arbitrary>], iteration_bounds = array<i64: 2, 2>, scalar_prefetch = 0 : i64, scratch_operands = 1 : i64, tpu.core_type = #tpu.core_type<tc>, window_params = [{transform_indices = @transform_0, window_bounds = array<i64: 1, 8, 32>}, {pipeline_mode = #tpu.pipeline_mode<synchronous>, transform_indices = @transform_1, window_bounds = array<i64: 8, 32>}, {pipeline_mode = #tpu.pipeline_mode<synchronous>, transform_indices = @transform_2, window_bounds = array<i64: 1, 32>}, {transform_indices = @transform_3, window_bounds = array<i64: 1, 1, 8>}, {transform_indices = @transform_4, window_bounds = array<i64: 1, 8, 1>}, {pipeline_mode = #tpu.pipeline_mode<synchronous>, transform_indices = @transform_5, window_bounds = array<i64: 1, 32>}, {pipeline_mode = #tpu.pipeline_mode<synchronous>, transform_indices = @transform_6, window_bounds = array<i64: 1, 32>}, {transform_indices = @transform_7, window_bounds = array<i64: 1, 32, 96>}, {transform_indices = @transform_8, window_bounds = array<i64: 1, 1, 96>}, {transform_indices = @transform_9, window_bounds = array<i64: 1, 32, 32>}, {transform_indices = @transform_10, window_bounds = array<i64: 1, 1, 32>}, {transform_indices = @transform_11, window_bounds = array<i64: 1, 1, 32>}, {transform_indices = @transform_12, window_bounds = array<i64: 1, 1, 32>}, {transform_indices = @transform_13, window_bounds = array<i64: 1, 32, 64>}, {transform_indices = @transform_14, window_bounds = array<i64: 1, 1, 64>}, {transform_indices = @transform_15, window_bounds = array<i64: 1, 64, 32>}, {transform_indices = @transform_16, window_bounds = array<i64: 1, 1, 32>}, {transform_indices = @transform_17, window_bounds = array<i64: 1, 1, 32>}, {transform_indices = @transform_18, window_bounds = array<i64: 1, 1, 32>}, {pipeline_mode = #tpu.pipeline_mode<synchronous>, transform_indices = @transform_19, window_bounds = array<i64: 32, 32>}, {pipeline_mode = #tpu.pipeline_mode<synchronous>, transform_indices = @transform_20, window_bounds = array<i64: 1, 32>}, {pipeline_mode = #tpu.pipeline_mode<synchronous>, transform_indices = @transform_21, window_bounds = array<i64: 1, 32>}, {pipeline_mode = #tpu.pipeline_mode<synchronous>, transform_indices = @transform_22, window_bounds = array<i64: 1, 32>}, {pipeline_mode = #tpu.pipeline_mode<synchronous>, transform_indices = @transform_23, window_bounds = array<i64: 128, 32>}, {pipeline_mode = #tpu.pipeline_mode<synchronous>, transform_indices = @transform_24, window_bounds = array<i64: 1, 128>}, {transform_indices = @transform_25, window_bounds = array<i64: 1, 8, 128>}, {transform_indices = @transform_26, window_bounds = array<i64: 1, 1, 2>}, {transform_indices = @transform_27, window_bounds = array<i64: 1, 8, 32>}, {transform_indices = @transform_28, window_bounds = array<i64: 1, 1, 8, 32>}]} {
    %c0_i32 = arith.constant 0 : i32
    %0 = arith.cmpi eq, %arg1, %c0_i32 : i32
    %1 = arith.extui %0 : i1 to i32
    %c0_i32_0 = arith.constant 0 : i32
    %2 = arith.cmpi ne, %1, %c0_i32_0 : i32
    scf.if %2 {
      %c0_73 = arith.constant 0 : index
      %c0_74 = arith.constant 0 : index
      %c0_75 = arith.constant 0 : index
      %155 = vector.load %arg2[%c0_73, %c0_74, %c0_75] : memref<1x8x32xf32, #tpu.memory_space<vmem>>, vector<1x8x32xf32>
      %156 = vector.shape_cast %155 : vector<1x8x32xf32> to vector<8x32xf32>
      %c0_76 = arith.constant 0 : index
      %c0_77 = arith.constant 0 : index
      %157 = vector.load %arg3[%c0_76, %c0_77] : memref<8x32xf32, #tpu.memory_space<vmem>>, vector<8x32xf32>
      %158 = arith.addf %156, %157 : vector<8x32xf32>
      %c0_78 = arith.constant 0 : index
      %c0_79 = arith.constant 0 : index
      %159 = vector.load %arg4[%c0_78, %c0_79] : memref<1x32xf32, #tpu.memory_space<vmem>>, vector<1x32xf32>
      %160 = vector.broadcast %159 : vector<1x32xf32> to vector<8x32xf32>
      %161 = arith.addf %158, %160 : vector<8x32xf32>
      %c0_80 = arith.constant 0 : index
      %c0_81 = arith.constant 0 : index
      %162 = vector.load %arg7[%c0_80, %c0_81] : memref<1x32xf32, #tpu.memory_space<vmem>>, vector<1x32xf32>
      %c0_82 = arith.constant 0 : index
      %c0_83 = arith.constant 0 : index
      %163 = vector.load %arg8[%c0_82, %c0_83] : memref<1x32xf32, #tpu.memory_space<vmem>>, vector<1x32xf32>
      %cst_84 = arith.constant dense<0.000000e+00> : vector<8xf32>
      %164 = vector.multi_reduction <add>, %161, %cst_84 [1] : vector<8x32xf32> to vector<8xf32>
      %165 = vector.shape_cast %164 : vector<8xf32> to vector<8x1xf32>
      %cst_85 = arith.constant 3.200000e+01 : f32
      %166 = vector.broadcast %cst_85 : f32 to vector<8x1xf32>
      %167 = arith.divf %165, %166 : vector<8x1xf32>
      %168 = vector.broadcast %167 : vector<8x1xf32> to vector<8x32xf32>
      %169 = arith.subf %161, %168 : vector<8x32xf32>
      %170 = arith.mulf %169, %169 : vector<8x32xf32>
      %cst_86 = arith.constant dense<0.000000e+00> : vector<8xf32>
      %171 = vector.multi_reduction <add>, %170, %cst_86 [1] : vector<8x32xf32> to vector<8xf32>
      %172 = vector.shape_cast %171 : vector<8xf32> to vector<8x1xf32>
      %cst_87 = arith.constant 3.200000e+01 : f32
      %173 = vector.broadcast %cst_87 : f32 to vector<8x1xf32>
      %174 = arith.divf %172, %173 : vector<8x1xf32>
      %175 = vector.broadcast %167 : vector<8x1xf32> to vector<8x32xf32>
      %176 = arith.subf %161, %175 : vector<8x32xf32>
      %cst_88 = arith.constant 9.99999996E-13 : f32
      %177 = vector.broadcast %cst_88 : f32 to vector<8x1xf32>
      %178 = arith.addf %174, %177 : vector<8x1xf32>
      %179 = math.rsqrt %178 : vector<8x1xf32>
      %180 = vector.broadcast %179 : vector<8x1xf32> to vector<8x32xf32>
      %181 = arith.mulf %176, %180 : vector<8x32xf32>
      %182 = vector.broadcast %162 : vector<1x32xf32> to vector<8x32xf32>
      %183 = arith.mulf %181, %182 : vector<8x32xf32>
      %184 = vector.broadcast %163 : vector<1x32xf32> to vector<8x32xf32>
      %185 = arith.addf %183, %184 : vector<8x32xf32>
      %c0_89 = arith.constant 0 : index
      %c0_90 = arith.constant 0 : index
      %186 = vector.load %arg31[%c0_89, %c0_90] : memref<8x32xf32, #tpu.memory_space<vmem>>, vector<8x32xf32>
      tpu.vector_store %arg31[%c0_89, %c0_90], %185 {strides = array<i32>} : memref<8x32xf32, #tpu.memory_space<vmem>>, vector<8x32xf32>,
      %c0_91 = arith.constant 0 : index
      %c0_92 = arith.constant 0 : index
      %c0_93 = arith.constant 0 : index
      %187 = vector.load %arg29[%c0_91, %c0_92, %c0_93] : memref<1x8x32xf32, #tpu.memory_space<vmem>>, vector<1x8x32xf32>
      %188 = vector.shape_cast %187 : vector<1x8x32xf32> to vector<8x32xf32>
      %189 = vector.shape_cast %185 : vector<8x32xf32> to vector<1x8x32xf32>
      tpu.vector_store %arg29[%c0_91, %c0_92, %c0_93], %189 {strides = array<i32>} : memref<1x8x32xf32, #tpu.memory_space<vmem>>, vector<1x8x32xf32>,
    } else {
    }
    %c0 = arith.constant 0 : index
    %c0_1 = arith.constant 0 : index
    %3 = vector.load %arg31[%c0, %c0_1] : memref<8x32xf32, #tpu.memory_space<vmem>>, vector<8x32xf32>
    %c0_2 = arith.constant 0 : index
    %c0_3 = arith.constant 0 : index
    %c0_4 = arith.constant 0 : index
    %4 = vector.load %arg5[%c0_2, %c0_3, %c0_4] : memref<1x1x8xf32, #tpu.memory_space<vmem>>, vector<1x1x8xf32>
    %5 = vector.shape_cast %4 : vector<1x1x8xf32> to vector<1x8xf32>
    %c0_5 = arith.constant 0 : index
    %c0_6 = arith.constant 0 : index
    %c0_7 = arith.constant 0 : index
    %6 = vector.load %arg9[%c0_5, %c0_6, %c0_7] : memref<1x32x96xbf16, #tpu.memory_space<vmem>>, vector<1x32x96xbf16>
    %7 = vector.shape_cast %6 : vector<1x32x96xbf16> to vector<32x96xbf16>
    %8 = arith.truncf %3 : vector<8x32xf32> to vector<8x32xbf16>
    %cst = arith.constant dense<0.000000e+00> : vector<8x96xf32>
    %9 = tpu.matmul %8, %7, %cst {dimension_numbers = #tpu.dot_dimension_numbers<[1], [0], [0], [1], [0, 0, 1, 1], [], []>} : vector<8x32xbf16>, vector<32x96xbf16>, vector<8x96xf32> -> vector<8x96xf32>
    %c0_8 = arith.constant 0 : index
    %c0_9 = arith.constant 0 : index
    %c0_10 = arith.constant 0 : index
    %10 = vector.load %arg10[%c0_8, %c0_9, %c0_10] : memref<1x1x96xf32, #tpu.memory_space<vmem>>, vector<1x1x96xf32>
    %11 = vector.shape_cast %10 : vector<1x1x96xf32> to vector<1x96xf32>
    %12 = vector.broadcast %11 : vector<1x96xf32> to vector<8x96xf32>
    %13 = arith.addf %9, %12 : vector<8x96xf32>
    %14 = vector.extract_strided_slice %13 {offsets = [0, 0], sizes = [8, 16], strides = [1, 1]} : vector<8x96xf32> to vector<8x16xf32>
    %15 = vector.extract_strided_slice %13 {offsets = [0, 32], sizes = [8, 16], strides = [1, 1]} : vector<8x96xf32> to vector<8x16xf32>
    %16 = vector.extract_strided_slice %13 {offsets = [0, 64], sizes = [8, 16], strides = [1, 1]} : vector<8x96xf32> to vector<8x16xf32>
    %17 = arith.truncf %14 : vector<8x16xf32> to vector<8x16xbf16>
    %18 = arith.truncf %15 : vector<8x16xf32> to vector<8x16xbf16>
    %cst_11 = arith.constant dense<0.000000e+00> : vector<8x8xf32>
    %19 = tpu.matmul %17, %18, %cst_11 {dimension_numbers = #tpu.dot_dimension_numbers<[1], [1], [0], [0], [0, 0, 1, 0], [], []>} : vector<8x16xbf16>, vector<8x16xbf16>, vector<8x8xf32> -> vector<8x8xf32>
    %20 = vector.broadcast %5 : vector<1x8xf32> to vector<8x8xf32>
    %21 = arith.addf %19, %20 : vector<8x8xf32>
    %cst_12 = arith.constant dense<0xFF800000> : vector<8xf32>
    %22 = vector.multi_reduction <maximumf>, %21, %cst_12 [1] : vector<8x8xf32> to vector<8xf32>
    %23 = vector.shape_cast %22 : vector<8xf32> to vector<8x1xf32>
    %24 = vector.broadcast %23 : vector<8x1xf32> to vector<8x8xf32>
    %25 = arith.subf %21, %24 : vector<8x8xf32>
    %26 = math.exp %25 : vector<8x8xf32>
    %cst_13 = arith.constant dense<0.000000e+00> : vector<8xf32>
    %27 = vector.multi_reduction <add>, %26, %cst_13 [1] : vector<8x8xf32> to vector<8xf32>
    %28 = vector.shape_cast %27 : vector<8xf32> to vector<8x1xf32>
    %29 = tpu.reciprocal %28 {approx = true} : vector<8x1xf32> -> vector<8x1xf32>
    %30 = vector.broadcast %29 : vector<8x1xf32> to vector<8x8xf32>
    %31 = arith.mulf %26, %30 : vector<8x8xf32>
    %32 = arith.truncf %31 : vector<8x8xf32> to vector<8x8xbf16>
    %33 = arith.truncf %16 : vector<8x16xf32> to vector<8x16xbf16>
    %cst_14 = arith.constant dense<0.000000e+00> : vector<8x16xf32>
    %34 = tpu.matmul %32, %33, %cst_14 {dimension_numbers = #tpu.dot_dimension_numbers<[1], [0], [0], [1], [0, 0, 1, 1], [], []>} : vector<8x8xbf16>, vector<8x16xbf16>, vector<8x16xf32> -> vector<8x16xf32>
    %35 = vector.extract_strided_slice %13 {offsets = [0, 16], sizes = [8, 16], strides = [1, 1]} : vector<8x96xf32> to vector<8x16xf32>
    %36 = vector.extract_strided_slice %13 {offsets = [0, 48], sizes = [8, 16], strides = [1, 1]} : vector<8x96xf32> to vector<8x16xf32>
    %37 = vector.extract_strided_slice %13 {offsets = [0, 80], sizes = [8, 16], strides = [1, 1]} : vector<8x96xf32> to vector<8x16xf32>
    %38 = arith.truncf %35 : vector<8x16xf32> to vector<8x16xbf16>
    %39 = arith.truncf %36 : vector<8x16xf32> to vector<8x16xbf16>
    %cst_15 = arith.constant dense<0.000000e+00> : vector<8x8xf32>
    %40 = tpu.matmul %38, %39, %cst_15 {dimension_numbers = #tpu.dot_dimension_numbers<[1], [1], [0], [0], [0, 0, 1, 0], [], []>} : vector<8x16xbf16>, vector<8x16xbf16>, vector<8x8xf32> -> vector<8x8xf32>
    %41 = vector.broadcast %5 : vector<1x8xf32> to vector<8x8xf32>
    %42 = arith.addf %40, %41 : vector<8x8xf32>
    %cst_16 = arith.constant dense<0xFF800000> : vector<8xf32>
    %43 = vector.multi_reduction <maximumf>, %42, %cst_16 [1] : vector<8x8xf32> to vector<8xf32>
    %44 = vector.shape_cast %43 : vector<8xf32> to vector<8x1xf32>
    %45 = vector.broadcast %44 : vector<8x1xf32> to vector<8x8xf32>
    %46 = arith.subf %42, %45 : vector<8x8xf32>
    %47 = math.exp %46 : vector<8x8xf32>
    %cst_17 = arith.constant dense<0.000000e+00> : vector<8xf32>
    %48 = vector.multi_reduction <add>, %47, %cst_17 [1] : vector<8x8xf32> to vector<8xf32>
    %49 = vector.shape_cast %48 : vector<8xf32> to vector<8x1xf32>
    %50 = tpu.reciprocal %49 {approx = true} : vector<8x1xf32> -> vector<8x1xf32>
    %51 = vector.broadcast %50 : vector<8x1xf32> to vector<8x8xf32>
    %52 = arith.mulf %47, %51 : vector<8x8xf32>
    %53 = arith.truncf %52 : vector<8x8xf32> to vector<8x8xbf16>
    %54 = arith.truncf %37 : vector<8x16xf32> to vector<8x16xbf16>
    %cst_18 = arith.constant dense<0.000000e+00> : vector<8x16xf32>
    %55 = tpu.matmul %53, %54, %cst_18 {dimension_numbers = #tpu.dot_dimension_numbers<[1], [0], [0], [1], [0, 0, 1, 1], [], []>} : vector<8x8xbf16>, vector<8x16xbf16>, vector<8x16xf32> -> vector<8x16xf32>
    %56 = tpu.concatenate %34, %55 in 1 : vector<8x16xf32>, vector<8x16xf32> -> vector<8x32xf32>
    %c0_19 = arith.constant 0 : index
    %c0_20 = arith.constant 0 : index
    %c0_21 = arith.constant 0 : index
    %57 = vector.load %arg11[%c0_19, %c0_20, %c0_21] : memref<1x32x32xbf16, #tpu.memory_space<vmem>>, vector<1x32x32xbf16>
    %58 = vector.shape_cast %57 : vector<1x32x32xbf16> to vector<32x32xbf16>
    %59 = arith.truncf %56 : vector<8x32xf32> to vector<8x32xbf16>
    %cst_22 = arith.constant dense<0.000000e+00> : vector<8x32xf32>
    %60 = tpu.matmul %59, %58, %cst_22 {dimension_numbers = #tpu.dot_dimension_numbers<[1], [0], [0], [1], [0, 0, 1, 1], [], []>} : vector<8x32xbf16>, vector<32x32xbf16>, vector<8x32xf32> -> vector<8x32xf32>
    %c0_23 = arith.constant 0 : index
    %c0_24 = arith.constant 0 : index
    %c0_25 = arith.constant 0 : index
    %61 = vector.load %arg12[%c0_23, %c0_24, %c0_25] : memref<1x1x32xf32, #tpu.memory_space<vmem>>, vector<1x1x32xf32>
    %62 = vector.shape_cast %61 : vector<1x1x32xf32> to vector<1x32xf32>
    %63 = vector.broadcast %62 : vector<1x32xf32> to vector<8x32xf32>
    %64 = arith.addf %60, %63 : vector<8x32xf32>
    %65 = arith.addf %64, %3 : vector<8x32xf32>
    %c0_26 = arith.constant 0 : index
    %c0_27 = arith.constant 0 : index
    %c0_28 = arith.constant 0 : index
    %66 = vector.load %arg13[%c0_26, %c0_27, %c0_28] : memref<1x1x32xf32, #tpu.memory_space<vmem>>, vector<1x1x32xf32>
    %67 = vector.shape_cast %66 : vector<1x1x32xf32> to vector<1x32xf32>
    %c0_29 = arith.constant 0 : index
    %c0_30 = arith.constant 0 : index
    %c0_31 = arith.constant 0 : index
    %68 = vector.load %arg14[%c0_29, %c0_30, %c0_31] : memref<1x1x32xf32, #tpu.memory_space<vmem>>, vector<1x1x32xf32>
    %69 = vector.shape_cast %68 : vector<1x1x32xf32> to vector<1x32xf32>
    %cst_32 = arith.constant dense<0.000000e+00> : vector<8xf32>
    %70 = vector.multi_reduction <add>, %65, %cst_32 [1] : vector<8x32xf32> to vector<8xf32>
    %71 = vector.shape_cast %70 : vector<8xf32> to vector<8x1xf32>
    %cst_33 = arith.constant 3.200000e+01 : f32
    %72 = vector.broadcast %cst_33 : f32 to vector<8x1xf32>
    %73 = arith.divf %71, %72 : vector<8x1xf32>
    %74 = vector.broadcast %73 : vector<8x1xf32> to vector<8x32xf32>
    %75 = arith.subf %65, %74 : vector<8x32xf32>
    %76 = arith.mulf %75, %75 : vector<8x32xf32>
    %cst_34 = arith.constant dense<0.000000e+00> : vector<8xf32>
    %77 = vector.multi_reduction <add>, %76, %cst_34 [1] : vector<8x32xf32> to vector<8xf32>
    %78 = vector.shape_cast %77 : vector<8xf32> to vector<8x1xf32>
    %cst_35 = arith.constant 3.200000e+01 : f32
    %79 = vector.broadcast %cst_35 : f32 to vector<8x1xf32>
    %80 = arith.divf %78, %79 : vector<8x1xf32>
    %81 = vector.broadcast %73 : vector<8x1xf32> to vector<8x32xf32>
    %82 = arith.subf %65, %81 : vector<8x32xf32>
    %cst_36 = arith.constant 9.99999996E-13 : f32
    %83 = vector.broadcast %cst_36 : f32 to vector<8x1xf32>
    %84 = arith.addf %80, %83 : vector<8x1xf32>
    %85 = math.rsqrt %84 : vector<8x1xf32>
    %86 = vector.broadcast %85 : vector<8x1xf32> to vector<8x32xf32>
    %87 = arith.mulf %82, %86 : vector<8x32xf32>
    %88 = vector.broadcast %67 : vector<1x32xf32> to vector<8x32xf32>
    %89 = arith.mulf %87, %88 : vector<8x32xf32>
    %90 = vector.broadcast %69 : vector<1x32xf32> to vector<8x32xf32>
    %91 = arith.addf %89, %90 : vector<8x32xf32>
    %c0_37 = arith.constant 0 : index
    %c0_38 = arith.constant 0 : index
    %c0_39 = arith.constant 0 : index
    %92 = vector.load %arg15[%c0_37, %c0_38, %c0_39] : memref<1x32x64xbf16, #tpu.memory_space<vmem>>, vector<1x32x64xbf16>
    %93 = vector.shape_cast %92 : vector<1x32x64xbf16> to vector<32x64xbf16>
    %94 = arith.truncf %91 : vector<8x32xf32> to vector<8x32xbf16>
    %cst_40 = arith.constant dense<0.000000e+00> : vector<8x64xf32>
    %95 = tpu.matmul %94, %93, %cst_40 {dimension_numbers = #tpu.dot_dimension_numbers<[1], [0], [0], [1], [0, 0, 1, 1], [], []>} : vector<8x32xbf16>, vector<32x64xbf16>, vector<8x64xf32> -> vector<8x64xf32>
    %c0_41 = arith.constant 0 : index
    %c0_42 = arith.constant 0 : index
    %c0_43 = arith.constant 0 : index
    %96 = vector.load %arg16[%c0_41, %c0_42, %c0_43] : memref<1x1x64xf32, #tpu.memory_space<vmem>>, vector<1x1x64xf32>
    %97 = vector.shape_cast %96 : vector<1x1x64xf32> to vector<1x64xf32>
    %98 = vector.broadcast %97 : vector<1x64xf32> to vector<8x64xf32>
    %99 = arith.addf %95, %98 : vector<8x64xf32>
    %cst_44 = arith.constant 5.000000e-01 : f32
    %100 = vector.broadcast %cst_44 : f32 to vector<8x64xf32>
    %101 = arith.mulf %100, %99 : vector<8x64xf32>
    %cst_45 = arith.constant 4.471500e-02 : f32
    %102 = vector.broadcast %cst_45 : f32 to vector<8x64xf32>
    %103 = arith.mulf %102, %99 : vector<8x64xf32>
    %104 = arith.mulf %103, %99 : vector<8x64xf32>
    %105 = arith.mulf %104, %99 : vector<8x64xf32>
    %106 = arith.addf %99, %105 : vector<8x64xf32>
    %cst_46 = arith.constant 0.797884583 : f32
    %107 = vector.broadcast %cst_46 : f32 to vector<8x64xf32>
    %108 = arith.mulf %107, %106 : vector<8x64xf32>
    %109 = math.tanh %108 : vector<8x64xf32>
    %cst_47 = arith.constant 1.000000e+00 : f32
    %110 = vector.broadcast %cst_47 : f32 to vector<8x64xf32>
    %111 = arith.addf %110, %109 : vector<8x64xf32>
    %112 = arith.mulf %101, %111 : vector<8x64xf32>
    %c0_48 = arith.constant 0 : index
    %c0_49 = arith.constant 0 : index
    %c0_50 = arith.constant 0 : index
    %113 = vector.load %arg17[%c0_48, %c0_49, %c0_50] : memref<1x64x32xbf16, #tpu.memory_space<vmem>>, vector<1x64x32xbf16>
    %114 = vector.shape_cast %113 : vector<1x64x32xbf16> to vector<64x32xbf16>
    %115 = arith.truncf %112 : vector<8x64xf32> to vector<8x64xbf16>
    %cst_51 = arith.constant dense<0.000000e+00> : vector<8x32xf32>
    %116 = tpu.matmul %115, %114, %cst_51 {dimension_numbers = #tpu.dot_dimension_numbers<[1], [0], [0], [1], [0, 0, 1, 1], [], []>} : vector<8x64xbf16>, vector<64x32xbf16>, vector<8x32xf32> -> vector<8x32xf32>
    %c0_52 = arith.constant 0 : index
    %c0_53 = arith.constant 0 : index
    %c0_54 = arith.constant 0 : index
    %117 = vector.load %arg18[%c0_52, %c0_53, %c0_54] : memref<1x1x32xf32, #tpu.memory_space<vmem>>, vector<1x1x32xf32>
    %118 = vector.shape_cast %117 : vector<1x1x32xf32> to vector<1x32xf32>
    %119 = vector.broadcast %118 : vector<1x32xf32> to vector<8x32xf32>
    %120 = arith.addf %116, %119 : vector<8x32xf32>
    %121 = arith.addf %120, %91 : vector<8x32xf32>
    %c0_55 = arith.constant 0 : index
    %c0_56 = arith.constant 0 : index
    %c0_57 = arith.constant 0 : index
    %122 = vector.load %arg19[%c0_55, %c0_56, %c0_57] : memref<1x1x32xf32, #tpu.memory_space<vmem>>, vector<1x1x32xf32>
    %123 = vector.shape_cast %122 : vector<1x1x32xf32> to vector<1x32xf32>
    %c0_58 = arith.constant 0 : index
    %c0_59 = arith.constant 0 : index
    %c0_60 = arith.constant 0 : index
    %124 = vector.load %arg20[%c0_58, %c0_59, %c0_60] : memref<1x1x32xf32, #tpu.memory_space<vmem>>, vector<1x1x32xf32>
    %125 = vector.shape_cast %124 : vector<1x1x32xf32> to vector<1x32xf32>
    %cst_61 = arith.constant dense<0.000000e+00> : vector<8xf32>
    %126 = vector.multi_reduction <add>, %121, %cst_61 [1] : vector<8x32xf32> to vector<8xf32>
    %127 = vector.shape_cast %126 : vector<8xf32> to vector<8x1xf32>
    %cst_62 = arith.constant 3.200000e+01 : f32
    %128 = vector.broadcast %cst_62 : f32 to vector<8x1xf32>
    %129 = arith.divf %127, %128 : vector<8x1xf32>
    %130 = vector.broadcast %129 : vector<8x1xf32> to vector<8x32xf32>
    %131 = arith.subf %121, %130 : vector<8x32xf32>
    %132 = arith.mulf %131, %131 : vector<8x32xf32>
    %cst_63 = arith.constant dense<0.000000e+00> : vector<8xf32>
    %133 = vector.multi_reduction <add>, %132, %cst_63 [1] : vector<8x32xf32> to vector<8xf32>
    %134 = vector.shape_cast %133 : vector<8xf32> to vector<8x1xf32>
    %cst_64 = arith.constant 3.200000e+01 : f32
    %135 = vector.broadcast %cst_64 : f32 to vector<8x1xf32>
    %136 = arith.divf %134, %135 : vector<8x1xf32>
    %137 = vector.broadcast %129 : vector<8x1xf32> to vector<8x32xf32>
    %138 = arith.subf %121, %137 : vector<8x32xf32>
    %cst_65 = arith.constant 9.99999996E-13 : f32
    %139 = vector.broadcast %cst_65 : f32 to vector<8x1xf32>
    %140 = arith.addf %136, %139 : vector<8x1xf32>
    %141 = math.rsqrt %140 : vector<8x1xf32>
    %142 = vector.broadcast %141 : vector<8x1xf32> to vector<8x32xf32>
    %143 = arith.mulf %138, %142 : vector<8x32xf32>
    %144 = vector.broadcast %123 : vector<1x32xf32> to vector<8x32xf32>
    %145 = arith.mulf %143, %144 : vector<8x32xf32>
    %146 = vector.broadcast %125 : vector<1x32xf32> to vector<8x32xf32>
    %147 = arith.addf %145, %146 : vector<8x32xf32>
    %c0_66 = arith.constant 0 : index
    %c0_67 = arith.constant 0 : index
    %148 = vector.load %arg31[%c0_66, %c0_67] : memref<8x32xf32, #tpu.memory_space<vmem>>, vector<8x32xf32>
    tpu.vector_store %arg31[%c0_66, %c0_67], %147 {strides = array<i32>} : memref<8x32xf32, #tpu.memory_space<vmem>>, vector<8x32xf32>,
    %c0_68 = arith.constant 0 : index
    %c0_69 = arith.constant 0 : index
    %c0_70 = arith.constant 0 : index
    %c0_71 = arith.constant 0 : index
    %149 = vector.load %arg30[%c0_68, %c0_69, %c0_70, %c0_71] : memref<1x1x8x32xf32, #tpu.memory_space<vmem>>, vector<1x1x8x32xf32>
    %150 = vector.shape_cast %149 : vector<1x1x8x32xf32> to vector<8x32xf32>
    %151 = vector.shape_cast %147 : vector<8x32xf32> to vector<1x1x8x32xf32>
    tpu.vector_store %arg30[%c0_68, %c0_69, %c0_70, %c0_71], %151 {strides = array<i32>} : memref<1x1x8x32xf32, #tpu.memory_space<vmem>>, vector<1x1x8x32xf32>,
    %c1_i32 = arith.constant 1 : i32
    %152 = arith.cmpi eq, %arg1, %c1_i32 : i32
    %153 = arith.extui %152 : i1 to i32
    %c0_i32_72 = arith.constant 0 : i32
    %154 = arith.cmpi ne, %153, %c0_i32_72 : i32
    scf.if %154 {
      %c0_73 = arith.constant 0 : index
      %c0_74 = arith.constant 0 : index
      %155 = vector.load %arg21[%c0_73, %c0_74] : memref<32x32xbf16, #tpu.memory_space<vmem>>, vector<32x32xbf16>
      %156 = arith.truncf %147 : vector<8x32xf32> to vector<8x32xbf16>
      %cst_75 = arith.constant dense<0.000000e+00> : vector<8x32xf32>
      %157 = tpu.matmul %156, %155, %cst_75 {dimension_numbers = #tpu.dot_dimension_numbers<[1], [0], [0], [1], [0, 0, 1, 1], [], []>} : vector<8x32xbf16>, vector<32x32xbf16>, vector<8x32xf32> -> vector<8x32xf32>
      %c0_76 = arith.constant 0 : index
      %c0_77 = arith.constant 0 : index
      %158 = vector.load %arg22[%c0_76, %c0_77] : memref<1x32xf32, #tpu.memory_space<vmem>>, vector<1x32xf32>
      %159 = vector.broadcast %158 : vector<1x32xf32> to vector<8x32xf32>
      %160 = arith.addf %157, %159 : vector<8x32xf32>
      %cst_78 = arith.constant 5.000000e-01 : f32
      %161 = vector.broadcast %cst_78 : f32 to vector<8x32xf32>
      %162 = arith.mulf %161, %160 : vector<8x32xf32>
      %cst_79 = arith.constant 4.471500e-02 : f32
      %163 = vector.broadcast %cst_79 : f32 to vector<8x32xf32>
      %164 = arith.mulf %163, %160 : vector<8x32xf32>
      %165 = arith.mulf %164, %160 : vector<8x32xf32>
      %166 = arith.mulf %165, %160 : vector<8x32xf32>
      %167 = arith.addf %160, %166 : vector<8x32xf32>
      %cst_80 = arith.constant 0.797884583 : f32
      %168 = vector.broadcast %cst_80 : f32 to vector<8x32xf32>
      %169 = arith.mulf %168, %167 : vector<8x32xf32>
      %170 = math.tanh %169 : vector<8x32xf32>
      %cst_81 = arith.constant 1.000000e+00 : f32
      %171 = vector.broadcast %cst_81 : f32 to vector<8x32xf32>
      %172 = arith.addf %171, %170 : vector<8x32xf32>
      %173 = arith.mulf %162, %172 : vector<8x32xf32>
      %c0_82 = arith.constant 0 : index
      %c0_83 = arith.constant 0 : index
      %174 = vector.load %arg23[%c0_82, %c0_83] : memref<1x32xf32, #tpu.memory_space<vmem>>, vector<1x32xf32>
      %c0_84 = arith.constant 0 : index
      %c0_85 = arith.constant 0 : index
      %175 = vector.load %arg24[%c0_84, %c0_85] : memref<1x32xf32, #tpu.memory_space<vmem>>, vector<1x32xf32>
      %cst_86 = arith.constant dense<0.000000e+00> : vector<8xf32>
      %176 = vector.multi_reduction <add>, %173, %cst_86 [1] : vector<8x32xf32> to vector<8xf32>
      %177 = vector.shape_cast %176 : vector<8xf32> to vector<8x1xf32>
      %cst_87 = arith.constant 3.200000e+01 : f32
      %178 = vector.broadcast %cst_87 : f32 to vector<8x1xf32>
      %179 = arith.divf %177, %178 : vector<8x1xf32>
      %180 = vector.broadcast %179 : vector<8x1xf32> to vector<8x32xf32>
      %181 = arith.subf %173, %180 : vector<8x32xf32>
      %182 = arith.mulf %181, %181 : vector<8x32xf32>
      %cst_88 = arith.constant dense<0.000000e+00> : vector<8xf32>
      %183 = vector.multi_reduction <add>, %182, %cst_88 [1] : vector<8x32xf32> to vector<8xf32>
      %184 = vector.shape_cast %183 : vector<8xf32> to vector<8x1xf32>
      %cst_89 = arith.constant 3.200000e+01 : f32
      %185 = vector.broadcast %cst_89 : f32 to vector<8x1xf32>
      %186 = arith.divf %184, %185 : vector<8x1xf32>
      %187 = vector.broadcast %179 : vector<8x1xf32> to vector<8x32xf32>
      %188 = arith.subf %173, %187 : vector<8x32xf32>
      %cst_90 = arith.constant 9.99999996E-13 : f32
      %189 = vector.broadcast %cst_90 : f32 to vector<8x1xf32>
      %190 = arith.addf %186, %189 : vector<8x1xf32>
      %191 = math.rsqrt %190 : vector<8x1xf32>
      %192 = vector.broadcast %191 : vector<8x1xf32> to vector<8x32xf32>
      %193 = arith.mulf %188, %192 : vector<8x32xf32>
      %194 = vector.broadcast %174 : vector<1x32xf32> to vector<8x32xf32>
      %195 = arith.mulf %193, %194 : vector<8x32xf32>
      %196 = vector.broadcast %175 : vector<1x32xf32> to vector<8x32xf32>
      %197 = arith.addf %195, %196 : vector<8x32xf32>
      %198 = arith.truncf %197 : vector<8x32xf32> to vector<8x32xbf16>
      %c0_91 = arith.constant 0 : index
      %c0_92 = arith.constant 0 : index
      %199 = vector.load %arg25[%c0_91, %c0_92] : memref<128x32xf32, #tpu.memory_space<vmem>>, vector<128x32xf32>
      %200 = arith.truncf %199 : vector<128x32xf32> to vector<128x32xbf16>
      %cst_93 = arith.constant dense<0.000000e+00> : vector<8x128xf32>
      %201 = tpu.matmul %198, %200, %cst_93 {dimension_numbers = #tpu.dot_dimension_numbers<[1], [1], [0], [0], [0, 0, 1, 0], [], []>} : vector<8x32xbf16>, vector<128x32xbf16>, vector<8x128xf32> -> vector<8x128xf32>
      %c0_94 = arith.constant 0 : index
      %c0_95 = arith.constant 0 : index
      %202 = vector.load %arg26[%c0_94, %c0_95] : memref<1x128xf32, #tpu.memory_space<vmem>>, vector<1x128xf32>
      %203 = vector.broadcast %202 : vector<1x128xf32> to vector<8x128xf32>
      %204 = arith.addf %201, %203 : vector<8x128xf32>
      %c0_96 = arith.constant 0 : index
      %c0_97 = arith.constant 0 : index
      %c0_98 = arith.constant 0 : index
      %205 = vector.load %arg27[%c0_96, %c0_97, %c0_98] : memref<1x8x128xf32, #tpu.memory_space<vmem>>, vector<1x8x128xf32>
      %206 = vector.shape_cast %205 : vector<1x8x128xf32> to vector<8x128xf32>
      %207 = vector.shape_cast %204 : vector<8x128xf32> to vector<1x8x128xf32>
      tpu.vector_store %arg27[%c0_96, %c0_97, %c0_98], %207 {strides = array<i32>} : memref<1x8x128xf32, #tpu.memory_space<vmem>>, vector<1x8x128xf32>,
      %c0_99 = arith.constant 0 : index
      %c0_100 = arith.constant 0 : index
      %c0_101 = arith.constant 0 : index
      %208 = vector.load %arg6[%c0_99, %c0_100, %c0_101] : memref<1x8x1xi32, #tpu.memory_space<vmem>>, vector<1x8x1xi32>
      %209 = vector.shape_cast %208 : vector<1x8x1xi32> to vector<8x1xi32>
      %c-100_i32 = arith.constant -100 : i32
      %210 = vector.broadcast %c-100_i32 : i32 to vector<8x1xi32>
      %211 = arith.cmpi ne, %209, %210 : vector<8x1xi32>
      %212 = arith.extui %211 : vector<8x1xi1> to vector<8x1xi32>
      %213 = arith.sitofp %212 : vector<8x1xi32> to vector<8x1xf32>
      %c-100_i32_102 = arith.constant -100 : i32
      %214 = vector.broadcast %c-100_i32_102 : i32 to vector<8x1xi32>
      %215 = arith.cmpi eq, %209, %214 : vector<8x1xi32>
      %c0_i32_103 = arith.constant 0 : i32
      %216 = vector.broadcast %c0_i32_103 : i32 to vector<8x1xi32>
      %217 = arith.select %215, %216, %209 : vector<8x1xi1>, vector<8x1xi32>
      %cst_104 = arith.constant dense<0xFF800000> : vector<8xf32>
      %218 = vector.multi_reduction <maximumf>, %204, %cst_104 [1] : vector<8x128xf32> to vector<8xf32>
      %219 = vector.shape_cast %218 : vector<8xf32> to vector<8x1xf32>
      %220 = vector.broadcast %219 : vector<8x1xf32> to vector<8x128xf32>
      %221 = arith.subf %204, %220 : vector<8x128xf32>
      %222 = math.exp %221 : vector<8x128xf32>
      %cst_105 = arith.constant dense<0.000000e+00> : vector<8xf32>
      %223 = vector.multi_reduction <add>, %222, %cst_105 [1] : vector<8x128xf32> to vector<8xf32>
      %224 = vector.shape_cast %223 : vector<8xf32> to vector<8x1xf32>
      %225 = math.log %224 : vector<8x1xf32>
      %226 = tpu.iota {dimensions = array<i32: 1>} : vector<8x128xi32>
      %227 = vector.broadcast %217 : vector<8x1xi32> to vector<8x128xi32>
      %228 = arith.cmpi eq, %226, %227 : vector<8x128xi32>
      %cst_106 = arith.constant 0.000000e+00 : f32
      %229 = vector.broadcast %cst_106 : f32 to vector<8x128xf32>
      %230 = arith.select %228, %221, %229 : vector<8x128xi1>, vector<8x128xf32>
      %cst_107 = arith.constant dense<0.000000e+00> : vector<8xf32>
      %231 = vector.multi_reduction <add>, %230, %cst_107 [1] : vector<8x128xf32> to vector<8xf32>
      %232 = vector.shape_cast %231 : vector<8xf32> to vector<8x1xf32>
      %233 = arith.subf %225, %232 : vector<8x1xf32>
      %234 = arith.mulf %233, %213 : vector<8x1xf32>
      %235 = tpu.concatenate %234, %213 in 1 : vector<8x1xf32>, vector<8x1xf32> -> vector<8x2xf32>
      %cst_108 = arith.constant dense<0.000000e+00> : vector<2xf32>
      %236 = vector.multi_reduction <add>, %235, %cst_108 [0] : vector<8x2xf32> to vector<2xf32>
      %237 = vector.shape_cast %236 : vector<2xf32> to vector<1x2xf32>
      %c0_109 = arith.constant 0 : index
      %c0_110 = arith.constant 0 : index
      %c0_111 = arith.constant 0 : index
      %238 = vector.load %arg28[%c0_109, %c0_110, %c0_111] : memref<1x1x2xf32, #tpu.memory_space<vmem>>, vector<1x1x2xf32>
      %239 = vector.shape_cast %238 : vector<1x1x2xf32> to vector<1x2xf32>
      %240 = vector.shape_cast %237 : vector<1x2xf32> to vector<1x1x2xf32>
      tpu.vector_store %arg28[%c0_109, %c0_110, %c0_111], %240 {strides = array<i32>} : memref<1x1x2xf32, #tpu.memory_space<vmem>>, vector<1x1x2xf32>,
    } else {
    }
    return
  }
  func.func @transform_0(%arg0: i32, %arg1: i32) -> (i32, i32, i32) {
    %c0_i32 = arith.constant 0 : i32
    %c0_i32_0 = arith.constant 0 : i32
    %c0_i32_1 = arith.constant 0 : i32
    return %arg0, %c0_i32, %c0_i32_0 : i32, i32, i32
  }
  func.func @transform_1(%arg0: i32, %arg1: i32) -> (i32, i32) {
    %c0_i32 = arith.constant 0 : i32
    %c0_i32_0 = arith.constant 0 : i32
    %c0_i32_1 = arith.constant 0 : i32
    return %c0_i32, %c0_i32_0 : i32, i32
  }
  func.func @transform_2(%arg0: i32, %arg1: i32) -> (i32, i32) {
    %c0_i32 = arith.constant 0 : i32
    %c0_i32_0 = arith.constant 0 : i32
    %c0_i32_1 = arith.constant 0 : i32
    return %c0_i32, %c0_i32_0 : i32, i32
  }
  func.func @transform_3(%arg0: i32, %arg1: i32) -> (i32, i32, i32) {
    %c0_i32 = arith.constant 0 : i32
    %c0_i32_0 = arith.constant 0 : i32
    %c0_i32_1 = arith.constant 0 : i32
    return %arg0, %c0_i32, %c0_i32_0 : i32, i32, i32
  }
  func.func @transform_4(%arg0: i32, %arg1: i32) -> (i32, i32, i32) {
    %c0_i32 = arith.constant 0 : i32
    %c0_i32_0 = arith.constant 0 : i32
    %c0_i32_1 = arith.constant 0 : i32
    return %arg0, %c0_i32, %c0_i32_0 : i32, i32, i32
  }
  func.func @transform_5(%arg0: i32, %arg1: i32) -> (i32, i32) {
    %c0_i32 = arith.constant 0 : i32
    %c0_i32_0 = arith.constant 0 : i32
    %c0_i32_1 = arith.constant 0 : i32
    return %c0_i32, %c0_i32_0 : i32, i32
  }
  func.func @transform_6(%arg0: i32, %arg1: i32) -> (i32, i32) {
    %c0_i32 = arith.constant 0 : i32
    %c0_i32_0 = arith.constant 0 : i32
    %c0_i32_1 = arith.constant 0 : i32
    return %c0_i32, %c0_i32_0 : i32, i32
  }
  func.func @transform_7(%arg0: i32, %arg1: i32) -> (i32, i32, i32) {
    %c0_i32 = arith.constant 0 : i32
    %c0_i32_0 = arith.constant 0 : i32
    %c0_i32_1 = arith.constant 0 : i32
    return %arg1, %c0_i32, %c0_i32_0 : i32, i32, i32
  }
  func.func @transform_8(%arg0: i32, %arg1: i32) -> (i32, i32, i32) {
    %c0_i32 = arith.constant 0 : i32
    %c0_i32_0 = arith.constant 0 : i32
    %c0_i32_1 = arith.constant 0 : i32
    return %arg1, %c0_i32, %c0_i32_0 : i32, i32, i32
  }
  func.func @transform_9(%arg0: i32, %arg1: i32) -> (i32, i32, i32) {
    %c0_i32 = arith.constant 0 : i32
    %c0_i32_0 = arith.constant 0 : i32
    %c0_i32_1 = arith.constant 0 : i32
    return %arg1, %c0_i32, %c0_i32_0 : i32, i32, i32
  }
  func.func @transform_10(%arg0: i32, %arg1: i32) -> (i32, i32, i32) {
    %c0_i32 = arith.constant 0 : i32
    %c0_i32_0 = arith.constant 0 : i32
    %c0_i32_1 = arith.constant 0 : i32
    return %arg1, %c0_i32, %c0_i32_0 : i32, i32, i32
  }
  func.func @transform_11(%arg0: i32, %arg1: i32) -> (i32, i32, i32) {
    %c0_i32 = arith.constant 0 : i32
    %c0_i32_0 = arith.constant 0 : i32
    %c0_i32_1 = arith.constant 0 : i32
    return %arg1, %c0_i32, %c0_i32_0 : i32, i32, i32
  }
  func.func @transform_12(%arg0: i32, %arg1: i32) -> (i32, i32, i32) {
    %c0_i32 = arith.constant 0 : i32
    %c0_i32_0 = arith.constant 0 : i32
    %c0_i32_1 = arith.constant 0 : i32
    return %arg1, %c0_i32, %c0_i32_0 : i32, i32, i32
  }
  func.func @transform_13(%arg0: i32, %arg1: i32) -> (i32, i32, i32) {
    %c0_i32 = arith.constant 0 : i32
    %c0_i32_0 = arith.constant 0 : i32
    %c0_i32_1 = arith.constant 0 : i32
    return %arg1, %c0_i32, %c0_i32_0 : i32, i32, i32
  }
  func.func @transform_14(%arg0: i32, %arg1: i32) -> (i32, i32, i32) {
    %c0_i32 = arith.constant 0 : i32
    %c0_i32_0 = arith.constant 0 : i32
    %c0_i32_1 = arith.constant 0 : i32
    return %arg1, %c0_i32, %c0_i32_0 : i32, i32, i32
  }
  func.func @transform_15(%arg0: i32, %arg1: i32) -> (i32, i32, i32) {
    %c0_i32 = arith.constant 0 : i32
    %c0_i32_0 = arith.constant 0 : i32
    %c0_i32_1 = arith.constant 0 : i32
    return %arg1, %c0_i32, %c0_i32_0 : i32, i32, i32
  }
  func.func @transform_16(%arg0: i32, %arg1: i32) -> (i32, i32, i32) {
    %c0_i32 = arith.constant 0 : i32
    %c0_i32_0 = arith.constant 0 : i32
    %c0_i32_1 = arith.constant 0 : i32
    return %arg1, %c0_i32, %c0_i32_0 : i32, i32, i32
  }
  func.func @transform_17(%arg0: i32, %arg1: i32) -> (i32, i32, i32) {
    %c0_i32 = arith.constant 0 : i32
    %c0_i32_0 = arith.constant 0 : i32
    %c0_i32_1 = arith.constant 0 : i32
    return %arg1, %c0_i32, %c0_i32_0 : i32, i32, i32
  }
  func.func @transform_18(%arg0: i32, %arg1: i32) -> (i32, i32, i32) {
    %c0_i32 = arith.constant 0 : i32
    %c0_i32_0 = arith.constant 0 : i32
    %c0_i32_1 = arith.constant 0 : i32
    return %arg1, %c0_i32, %c0_i32_0 : i32, i32, i32
  }
  func.func @transform_19(%arg0: i32, %arg1: i32) -> (i32, i32) {
    %c0_i32 = arith.constant 0 : i32
    %c0_i32_0 = arith.constant 0 : i32
    %c0_i32_1 = arith.constant 0 : i32
    return %c0_i32, %c0_i32_0 : i32, i32
  }
  func.func @transform_20(%arg0: i32, %arg1: i32) -> (i32, i32) {
    %c0_i32 = arith.constant 0 : i32
    %c0_i32_0 = arith.constant 0 : i32
    %c0_i32_1 = arith.constant 0 : i32
    return %c0_i32, %c0_i32_0 : i32, i32
  }
  func.func @transform_21(%arg0: i32, %arg1: i32) -> (i32, i32) {
    %c0_i32 = arith.constant 0 : i32
    %c0_i32_0 = arith.constant 0 : i32
    %c0_i32_1 = arith.constant 0 : i32
    return %c0_i32, %c0_i32_0 : i32, i32
  }
  func.func @transform_22(%arg0: i32, %arg1: i32) -> (i32, i32) {
    %c0_i32 = arith.constant 0 : i32
    %c0_i32_0 = arith.constant 0 : i32
    %c0_i32_1 = arith.constant 0 : i32
    return %c0_i32, %c0_i32_0 : i32, i32
  }
  func.func @transform_23(%arg0: i32, %arg1: i32) -> (i32, i32) {
    %c0_i32 = arith.constant 0 : i32
    %c0_i32_0 = arith.constant 0 : i32
    %c0_i32_1 = arith.constant 0 : i32
    return %c0_i32, %c0_i32_0 : i32, i32
  }
  func.func @transform_24(%arg0: i32, %arg1: i32) -> (i32, i32) {
    %c0_i32 = arith.constant 0 : i32
    %c0_i32_0 = arith.constant 0 : i32
    %c0_i32_1 = arith.constant 0 : i32
    return %c0_i32, %c0_i32_0 : i32, i32
  }
  func.func @transform_25(%arg0: i32, %arg1: i32) -> (i32, i32, i32) {
    %c0_i32 = arith.constant 0 : i32
    %c0_i32_0 = arith.constant 0 : i32
    %c0_i32_1 = arith.constant 0 : i32
    return %arg0, %c0_i32, %c0_i32_0 : i32, i32, i32
  }
  func.func @transform_26(%arg0: i32, %arg1: i32) -> (i32, i32, i32) {
    %c0_i32 = arith.constant 0 : i32
    %c0_i32_0 = arith.constant 0 : i32
    %c0_i32_1 = arith.constant 0 : i32
    return %arg0, %c0_i32, %c0_i32_0 : i32, i32, i32
  }
  func.func @transform_27(%arg0: i32, %arg1: i32) -> (i32, i32, i32) {
    %c0_i32 = arith.constant 0 : i32
    %c0_i32_0 = arith.constant 0 : i32
    %c0_i32_1 = arith.constant 0 : i32
    return %arg0, %c0_i32, %c0_i32_0 : i32, i32, i32
  }
  func.func @transform_28(%arg0: i32, %arg1: i32) -> (i32, i32, i32, i32) {
    %c0_i32 = arith.constant 0 : i32
    %c0_i32_0 = arith.constant 0 : i32
    %c0_i32_1 = arith.constant 0 : i32
    return %arg1, %arg0, %c0_i32, %c0_i32_0 : i32, i32, i32, i32
  }
}

</mosaic_0001>

<bundles_post_ra>
// kernel: tpu_custom_call.1
= control target key start
LH: loop header
LB: loop body
LE: loop exit
PB: predicated region body
PF: predicated region fallthrough
CT: control target
= control target key end

     0   :  { %s3264_s0 = inlined_call_operand.vmem [shape: f32[2,8,32], index: 0, kind: input, shape index: {}]   ;;  %s3265_s1 = inlined_call_operand.vmem [shape: f32[8,32], index: 1, kind: input, shape index: {}]   ;;  %s3266_s2 = inlined_call_operand.vmem [shape: f32[1,32], index: 2, kind: input, shape index: {}]   ;;  %s3267_s3 = inlined_call_operand.vmem [shape: f32[2,1,8], index: 3, kind: input, shape index: {}]   ;;  %s3268_s4 = inlined_call_operand.vmem [shape: s32[2,8,1], index: 4, kind: input, shape index: {}]   ;;  %s3269_s5 = inlined_call_operand.vmem [shape: f32[1,32], index: 5, kind: input, shape index: {}]   ;;  %s3270_s6 = inlined_call_operand.vmem [shape: f32[1,32], index: 6, kind: input, shape index: {}]   ;;  %s3271_s7 = inlined_call_operand.vmem [shape: bf16[2,32,96], index: 7, kind: input, shape index: {}]   ;;  %s3272_s8 = inlined_call_operand.vmem [shape: f32[2,1,96], index: 8, kind: input, shape index: {}]   ;;  %s3273_s9 = inlined_call_operand.vmem [shape: bf16[2,32,32], index: 9, kind: input, shape index: {}]   ;;  %s3274_s10 = inlined_call_operand.vmem [shape: f32[2,1,32], index: 10, kind: input, shape index: {}]   ;;  %s3275_s11 = inlined_call_operand.vmem [shape: f32[2,1,32], index: 11, kind: input, shape index: {}]   ;;  %s3276_s12 = inlined_call_operand.vmem [shape: f32[2,1,32], index: 12, kind: input, shape index: {}]   ;;  %s3277_s13 = inlined_call_operand.vmem [shape: bf16[2,32,64], index: 13, kind: input, shape index: {}]   ;;  %s3278_s14 = inlined_call_operand.vmem [shape: f32[2,1,64], index: 14, kind: input, shape index: {}]   ;;  %s3279_s15 = inlined_call_operand.vmem [shape: bf16[2,64,32], index: 15, kind: input, shape index: {}]   ;;  %s3280_s16 = inlined_call_operand.vmem [shape: f32[2,1,32], index: 16, kind: input, shape index: {}]   ;;  %s3281_s17 = inlined_call_operand.vmem [shape: f32[2,1,32], index: 17, kind: input, shape index: {}]   ;;  %s3282_s18 = inlined_call_operand.vmem [shape: f32[2,1,32], index: 18, kind: input, shape index: {}]   ;;  %s3283_s19 = inlined_call_operand.vmem [shape: bf16[32,32], index: 19, kind: input, shape index: {}]   ;;  %s3284_s20 = inlined_call_operand.vmem [shape: f32[1,32], index: 20, kind: input, shape index: {}]   ;;  %s3285_s21 = inlined_call_operand.vmem [shape: f32[1,32], index: 21, kind: input, shape index: {}]   ;;  %s3286_s22 = inlined_call_operand.vmem [shape: f32[1,32], index: 22, kind: input, shape index: {}]   ;;  %s3287_s23 = inlined_call_operand.vmem [shape: f32[128,32], index: 23, kind: input, shape index: {}]   ;;  %s3288_s24 = inlined_call_operand.vmem [shape: f32[1,128], index: 24, kind: input, shape index: {}]   ;;  %s3289_s25 = inlined_call_operand.hbm [shape: f32[2,8,128], index: 25, kind: output, shape index: {0}]   ;;  %s3290_s26 = inlined_call_operand.hbm [shape: f32[2,1,2], index: 26, kind: output, shape index: {1}]   ;;  %s3291_s27 = inlined_call_operand.hbm [shape: f32[2,8,32], index: 27, kind: output, shape index: {2}]   ;;  %s3292_s28 = inlined_call_operand.hbm [shape: f32[2,2,8,32], index: 28, kind: output, shape index: {3}]  }
   0x1   :  { %3327 = sst [smem:[#allocation36_spill]] %s3264_s0 }
   0x2   :  { %3328 = sst [smem:[#allocation37_spill]] %s3265_s1 }
   0x3   :  { %3329 = sst [smem:[#allocation38_spill]] %s3266_s2 }
   0x4   :  { %3330 = sst [smem:[#allocation39_spill]] %s3267_s3 }
   0x5   :  { %3331 = sst [smem:[#allocation40_spill]] %s3268_s4 }
   0x6   :  { %3332 = sst [smem:[#allocation41_spill]] %s3269_s5 }
   0x7   :  { %3333 = sst [smem:[#allocation42_spill]] %s3270_s6 }
   0x8   :  { %3334 = sst [smem:[#allocation43_spill]] %s3271_s7 }
   0x9   :  { %3335 = sst [smem:[#allocation44_spill]] %s3272_s8 }
   0xa   :  { %3336 = sst [smem:[#allocation45_spill]] %s3273_s9 }
   0xb   :  { %3337 = sst [smem:[#allocation46_spill]] %s3274_s10 }
   0xc   :  { %3338 = sst [smem:[#allocation47_spill]] %s3275_s11 }
   0xd   :  { %3339 = sst [smem:[#allocation48_spill]] %s3276_s12 }
   0xe   :  { %3340 = sst [smem:[#allocation49_spill]] %s3277_s13 }
   0xf   :  { %3341 = sst [smem:[#allocation50_spill]] %s3278_s14 }
  0x10   :  { %3342 = sst [smem:[#allocation51_spill]] %s3279_s15 }
  0x11   :  { %3343 = sst [smem:[#allocation52_spill]] %s3280_s16 }
  0x12   :  { %3344 = sst [smem:[#allocation53_spill]] %s3283_s19 }
  0x13   :  { %3345 = sst [smem:[#allocation54_spill]] %s3284_s20 }
  0x14   :  { %3346 = sst [smem:[#allocation55_spill]] %s3285_s21 }
  0x15   :  { %3347 = sst [smem:[#allocation56_spill]] %s3286_s22 }
  0x16   :  { %3348 = sst [smem:[#allocation57_spill]] %s3287_s23 }
  0x17   :  { %3349 = sst [smem:[#allocation58_spill]] %s3288_s24 }
  0x18   :  { %3350 = sst [smem:[#allocation59_spill]] %s3289_s25 }
  0x19   :  { %3351 = sst [smem:[#allocation60_spill]] %s3290_s26 }
  0x1a   :  { %3352 = sst [smem:[#allocation61_spill]] %s3291_s27 }
  0x1b   :  { %3353 = sst [smem:[#allocation62_spill]] %s3292_s28 }
  0x1c   :  { %34 = vsyncpa [#allocation4], 0 }
  0x1d   :  { %36 = vsyncpa [#allocation4 + $0x1], 0 }
  0x1e   :  { %37 = vsyncpa [#allocation6], 0 }
  0x1f   :  { %39 = vsyncpa [#allocation6 + $0x1], 0 }
  0x20   :  { %40 = vsyncpa [#allocation9], 0 }
  0x21   :  { %42 = vsyncpa [#allocation9 + $0x1], 0  ;;  %s2745_s8 = smov 0   ;;  %s2747_s5 = smov 0  }
  0x22   :  { %s2749_s9 = smov 0   ;;  %s2751_s30 = smov 0  }
  0x23   :  { %s2753_s3 = smov 0   ;;  %s2755_s6 = smov 0  }
  0x24   :  { %s2757_s10 = smov 0   ;;  %s2759_s0 = smov 0  }
  0x25   :  { %s2761_s11 = smov 0   ;;  %s2763_s29 = smov 0  }
  0x26   :  { %s2765_s2 = smov 0  }
  0x27 LB: > { %3354 = sst [smem:[#allocation13_spill]] %s2547_s8  ;;  %s3296_s7 = sadd.s32 4294967295, %s2587_s2   ;;  %s2587_s2 = sphi %s2765_s2, %s48_s2   ;;  %s2583_s29 = sphi %s2763_s29, %s3455_s29   ;;  %s2579_s11 = sphi %s2761_s11, %s3454_s11   ;;  %s2575_s0 = sphi %s2759_s0, %s3453_s0   ;;  %s2571_s10 = sphi %s2757_s10, %s3452_s10   ;;  %s2567_s6 = sphi %s2755_s6, %s3451_s6   ;;  %s2563_s3 = sphi %s2753_s3, %s3450_s3   ;;  %s2559_s30 = sphi %s2751_s30, %s3449_s30   ;;  %s2555_s9 = sphi %s2749_s9, %s3448_s9   ;;  %s2551_s5 = sphi %s2747_s5, %s3447_s5   ;;  %s2547_s8 = sphi %s2745_s8, %s3446_s8  }
  0x28   : > { %3355 = sst [smem:[#allocation14_spill]] %s2551_s5  ;;  %s57_s1 = sadd.s32 1, %s2579_s11 }
  0x29   : > { %3356 = sst [smem:[#allocation15_spill]] %s2555_s9  ;;  %s60_s4 = sadd.s32 1, %s2583_s29 }
  0x2a   : > { %3357 = sst [smem:[#allocation16_spill]] %s2559_s30  ;;  %p58_p0 = scmp.ge.s32.totalorder %s57_s1, 2 }
  0x2b   : > { %3358 = sst [smem:[#allocation17_spill]] %s2563_s3  ;;  %s667_s28 = sadd.s32 1, %s2567_s6 }
  0x2c   : > { %3359 = sst [smem:[#allocation18_spill]] %s2567_s6  ;;  %p677_p1 = scmp.ne.s32.totalorder %s2567_s6, %s2563_s3 }
  0x2d   : > { %3360 = sst [smem:[#allocation19_spill]] %s2571_s10  ;;  %p2809_p2 = scmp.eq.s32.totalorder %s3296_s7, 3 }
  0x2e   : > { %3361 = sst [smem:[#allocation20_spill]] %s2575_s0  ;;  %s3457_s1 = smov (%p58_p0, %s57_s1), 0 }
  0x2f   : > { %3362 = sst [smem:[#allocation21_spill]] %s2579_s11  ;;  %s3459_s4 = smov (!%p58_p0, %s60_s4), %s2583_s29 }
  0x30   : > { %3363 = sst [smem:[#allocation22_spill]] %s2583_s29  ;;  %p2818_p3 = por %p2809_p2, %p677_p1 }
  0x31   : > { %3364 = sst [smem:[#allocation23_spill]] %s2587_s2  ;;  %p683_p4 = scmp.ne.s32.totalorder %s2563_s3, %s2559_s30 }
  0x32   : > { %3366 = sst [smem:[#allocation24_spill]] %s3457_s1  ;;  %p62_p5 = scmp.ge.s32.totalorder %s3459_s4, 2 }
  0x33   : > { %s3367_s12 = scalar_select %p2818_p3, 1, 0 }
  0x34   : > { %s3369_s25 = sadd.s32 4294967294, %s2587_s2   ;;  %s742_s26 = ssub.s32 %s2579_s11, %s3457_s1 }
  0x35   : > { %3368 = sst [smem:[#allocation25_spill]] %s3367_s12  ;;  %p2826_p6 = scmp.eq.s32.totalorder %s3369_s25, 3 }
  0x36   : > { %s747_s24 = sadd.s32 1, %s2555_s9  ;;  %s3461_s4 = smov (%p62_p5, %s3459_s4), 0 }
  0x37   : > { %3371 = sst [smem:[#allocation26_spill]] %s3461_s4  ;;  %p2837_p7 = por %p2826_p6, %p683_p4 }
  0x38   : > { %p757_p8 = scmp.ne.s32.totalorder %s2555_s9, %s2551_s5  ;;  %s664_s30 = ssub.s32 %s2583_s29, %s3461_s4 }
  0x39   : > { %s3372_s12 = scalar_select %p2837_p7, 1, 0 }
  0x3a   : > { %p763_p9 = scmp.ne.s32.totalorder %s2551_s5, %s2547_s8  ;;  %p665_p10 = scmp.eq.s32.totalorder %s664_s30, 0 }
  0x3b   : > { %3373 = sst [smem:[#allocation27_spill]] %s3372_s12  ;;  %s744_s25 = sor.u32 %s742_s26, %s664_s30 }
  0x3c   : > { %p745_p11 = scmp.eq.s32.totalorder %s744_s25, 0  ;;  %p2849_p12 = por %p757_p8, %p2809_p2 }
  0x3d   : > { %s2854_s1 = scalar_select %p665_p10, %s2567_s6, %s667_s28  }
  0x3e   : > { %s3374_s22 = scalar_select %p2849_p12, 1, 0 }
  0x3f   : > { %3376 = sst [smem:[#allocation29_spill]] %s2854_s1  ;;  %p2861_p13 = por %p763_p9, %p2826_p6 }
  0x40   : > { %3375 = sst [smem:[#allocation28_spill]] %s3374_s22  ;;  %p2110_p0 = scmp.ge.s32.totalorder %s2587_s2, 1 }
  0x41   : > { %s2857_s11 = scalar_select %p745_p11, %s2555_s9, %s747_s24  }
  0x42   : > { %s3378_s21 = scalar_select %p2861_p13, 1, 0 }
  0x43   : > { %3377 = sst [smem:[#allocation30_spill]] %s2857_s11  ;;  %p912_p1 = scmp.lt.s32.totalorder %s2587_s2, 5 }
  0x44   : > { %3379 = sst [smem:[#allocation31_spill]] %s3378_s21 }
  0x45   : > { %p913_p4 = pnand %p2110_p0, %p912_p1 }
  0x47   : > { %916 = sbr.rel (%p913_p4) target bundleno = 3149 (0xc4d), region = 120 }
  0x4c   : > { %s2868_s26 = sand.u32 1, %s2563_s3   ;;  %s3304_s24 = sand.u32 1, %s2551_s5  }
  0x4d   : > { %s2111_s27 = sshll.u32 %s2868_s26, 3  ;;  %s2874_s28 = sshll.u32 %s3304_s24, 3 }
  0x4e   : > { %p1050_p2 = scmp.lt.s32.totalorder %s2575_s0, 1  ;;  %p1061_p5 = scmp.lt.s32.totalorder %s2571_s10, 1 }
  0x4f   : > { %s3382_s11 = sld [smem:[#allocation36_spill]]  ;;  %s2951_s3 = scalar_lea.vmem [#allocation3], %s2111_s27 }
  0x50   : > { %s2879_s30 = scalar_select %p1050_p2, %s2575_s0, 1 }
  0x51   : > { %s2882_s7 = scalar_select %p1061_p5, %s2571_s10, 1 }
  0x52   : > { %3380 = sst [smem:[#allocation32_spill]] %s2879_s30  ;;  %s2114_s25 = sshll.u32 %s2879_s30, 3 }
  0x53   : > { %s3383_s12 = sld [smem:[#allocation40_spill]]  ;;  %s2194_s5 = sshll.u32 %s2882_s7, 4 }
  0x54   : > { %s3386_s24 = sld [smem:[#allocation43_spill]]  ;;  %s1035_s6 = scalar_lea.vmem [#allocation5], %s2868_s26 }
  0x55   : > { %s1053_s9 = scalar_lea.vmem %s3382_s11, %s2114_s25  ;;  %s3388_s11 = sld [smem:[#allocation45_spill]] }
  0x56   : > { %s3391_s10 = sld [smem:[#allocation47_spill]]  ;;  %s3325_s21 = scalar_lea.vmem [#allocation8], %s2874_s28 }
  0x57   : > { %s3392_s20 = sld [smem:[#allocation48_spill]] }
  0x58   : > { %s3393_s13 = sld [smem:[#allocation49_spill]] }
  0x59   : > { %s2895_s22 = scalar_lea.vmem %s3383_s12, %s2114_s25  ;;  %s3390_s12 = sld [smem:[#allocation46_spill]] }
  0x5a   : > { %3384 = sst [smem:[#allocation33_spill]] %s2895_s22  ;;  %s2905_s29 = scalar_lea.vmem %s3386_s24, %s2194_s5 }
  0x5b   : > { %3387 = sst [smem:[#allocation34_spill]] %s2905_s29  ;;  %s2910_s1 = scalar_lea.vmem %s3388_s11, %s2194_s5 }
  0x5c   : > { %3389 = sst [smem:[#allocation35_spill]] %s2910_s1  ;;  %s1079_s0 = scalar_lea.vmem %s3391_s10, %s2882_s7 }
  0x5d   : > { %s1082_s19 = scalar_lea.vmem %s3392_s20, %s2882_s7  ;;  %s2197_s1 = sshll.u32 %s2882_s7, 5 }
  0x5e   : > { %s2927_s29 = scalar_lea.vmem %s3393_s13, %s2194_s5  ;;  %s3395_s15 = sld [smem:[#allocation51_spill]] }
  0x5f   : > { %s1076_s25 = scalar_lea.vmem %s3390_s12, %s2882_s7  ;;  %s3396_s16 = sld [smem:[#allocation52_spill]] }
  0x60   : > { %s1104_s24 = scalar_lea.vmem %s3282_s18, %s2882_s7  ;;  %s2954_s11 = scalar_lea.vmem [#allocation7], %s2111_s27 }
  0x64   : > { %s2937_s12 = scalar_lea.vmem %s3395_s15, %s2197_s1  ;;  %s3397_s1 = sld [smem:[#allocation19_spill]] }
  0x65   : > { %s1098_s30 = scalar_lea.vmem %s3396_s16, %s2882_s7 }
  0x6a   : > { %p2124_p6 = scmp.ne.s32.totalorder %s3397_s1, 0 }
  0x6b   : > { %s3398_s10 = sld [smem:[#allocation37_spill]] (!%p2124_p6) }
  0x6c   : > { %1109 = sbr.rel (%p2124_p6) target bundleno = 389 (0x185), region = 124  ;;  %s3399_s2 = sld [smem:[#allocation38_spill]] (!%p2124_p6) }
  0x6d   : > { %s3401_s1 = sld [smem:[#allocation42_spill]] (!%p2124_p6) }
  0x71   : > { %v1110_v0 = vld [vmem:[%s1053_s9] sm:$0xff]  ;;  %vm1120_vm0 = vcmask 261120   ;;  %v2589_v6 = vmov 32.0  }
  0x72   : > { %v1111_v1 = vld [vmem:[%s3398_s10] sm:$0xff]  ;;  %2334 = vrcp.f32 %v2589_v6 }
  0x73   : > { %v1112_v2 = vadd.f32 %v1111_v1, %v1110_v0  ;;  %v2331_v3 = vld [vmem:[%s3399_s2] ss:$0 sm:$0xff]  ;;  %s3400_s2 = sld [smem:[#allocation41_spill]] }
  0x74   : > { %v2333_v29 = vld [vmem:[%s3401_s1] ss:$0 sm:$0xff] }
  0x75   : > { %v1117_v4 = vadd.f32 %v2331_v3, %v1112_v2 }
  0x77   : > { %v1121_v5 = vsel %vm1120_vm0, %v1117_v4, 0.0 }
  0x78   : > { %1122 = vadd.xlane.f32.xlu0 %v1121_v5  ;;  %v2335_v7 = vpop.eup %2334 }
  0x79   : > { %v1125_v8 = vmul.f32 32.0, %v2335_v7  ;;  %vm1129_vm1 = vweird.f32 %v2335_v7  ;;  %v2332_v27 = vld [vmem:[%s3400_s2] ss:$0 sm:$0xff] }
  0x7b   : > { %v1126_v9 = vsub.f32 1.0, %v1125_v8 }
  0x7d   : > { %v1127_v10 = vmul.f32 %v2335_v7, %v1126_v9 }
  0x7f   : > { %v1128_v11 = vadd.f32 %v2335_v7, %v1127_v10 }
  0x81   : > { %v1130_v12 = vsel %vm1129_vm1, %v2335_v7, %v1128_v11 }
  0xeb   : > { %v1123_v13 = vpop.xlane.xlu0 %1122 }
  0xec   : > { %v1131_v14 = vmul.f32 %v1130_v12, %v1123_v13 }
  0xee   : > { %v1132_v15 = vsub.f32 %v1117_v4, %v1131_v14 }
  0xf0   : > { %v1133_v16 = vmul.f32 %v1132_v15, %v1132_v15 }
  0xf2   : > { %v1134_v17 = vsel %vm1120_vm0, %v1133_v16, 0.0 }
  0xf3   : > { %1135 = vadd.xlane.f32.xlu0 %v1134_v17 }
 0x166   : > { %v1136_v18 = vpop.xlane.xlu0 %1135 }
 0x167   : > { %v1137_v19 = vmul.f32 %v1136_v18, %v1130_v12 }
 0x169   : > { %v1138_v20 = vadd.f32 1e-12, %v1137_v19 }
 0x16b   : > { %2336 = vrsqrt.f32 %v1138_v20  ;;  %vm1145_vm3 = vweird.f32 %v1138_v20 }
 0x171   : > { %v2337_v21 = vpop.eup %2336 }
 0x172   : > { %v1140_v22 = vmul.f32 %v2337_v21, %v1138_v20  ;;  %vm1146_vm2 = vweird.f32 %v2337_v21 }
 0x173   : > { %vm1147_vm4 = vmor %vm1145_vm3, %vm1146_vm2 }
 0x174   : > { %v1141_v23 = vmul.f32 %v2337_v21, %v1140_v22 }
 0x176   : > { %v1142_v24 = vmul.f32 0.5, %v1141_v23 }
 0x178   : > { %v1143_v25 = vsub.f32 1.5, %v1142_v24 }
 0x17a   : > { %v1144_v26 = vmul.f32 %v2337_v21, %v1143_v25 }
 0x17c   : > { %v1148_v28 = vsel %vm1147_vm4, %v2337_v21, %v1144_v26 }
 0x17d   : > { %v1149_v30 = vmul.f32 %v1148_v28, %v1132_v15 }
 0x17f   : > { %v1153_v31 = vmul.f32 %v2332_v27, %v1149_v30 }
 0x181   : > { %v1157_v32 = vadd.f32 %v2333_v29, %v1153_v31 }
 0x183   : > { %1158 = vst.msk [vmem:[#allocation2] sm:$0xff] %vm1120_vm0, %v1157_v32 }
 0x184   : > { %1159 = vst.msk [vmem:[%s2954_s11] sm:$0xff] %vm1120_vm0, %v1157_v32 }
 0x185 PF: > { %s3402_s8 = sld [smem:[#allocation34_spill]]  ;;  %vm1183_vm5 = vcmask 261120   ;;  %s2590_s9 = smov 112   ;;  %vm1207_vm6 = vcmask 130048   ;;  %vm1245_vm7 = vcmask 1043456   ;;  %vm1227_vm8 = vcmask 64512  }
 0x186   : > { %s3403_s20 = sld [smem:[#allocation44_spill]]  ;;  %s2591_s27 = smov 96   ;;  %v2340_v23 = vld [vmem:[%s1076_s25] ss:$0 sm:$0xff]  ;;  %v2596_v29 = vmov 32.0   ;;  %vm1483_vm13 = vcmask 523264  }
 0x187   : > { %s2592_s2 = smov 80   ;;  %s2593_s5 = smov 64  }
 0x188   : > { %s2594_s4 = smov 48   ;;  %s3405_s1 = sld [smem:[#allocation32_spill]] }
 0x189   : > { %s3406_s10 = sld [smem:[#allocation39_spill]] }
 0x18a   : > { %v2977_v35 = vld [vmem:[#allocation2] sm:$0xff]  ;;  %s3412_s14 = sld [smem:[#allocation50_spill]] }
 0x18b   : > { %v2199_v33 = vld [vmem:[%s3402_s8 + $0x8] sm:$0xff]  ;;  %v2198_v34 = vld [vmem:[%s3402_s8] sm:$0xff]  ;;  %v1166_v36 = vpack.c.bf16 %v2977_v35, %v2977_v35 }
 0x18c   : > { %1193 = vmatpush.bf16.msra.mxu0 %v2199_v33  ;;  %s3404_s23 = scalar_lea.vmem %s3403_s20, %s2882_s7 }
 0x18d   : > { %v2338_v37 = vld [vmem:[%s3404_s23] ss:$0 sm:$0xff]  ;;  %s3408_s23 = sld [smem:[#allocation35_spill]] }
 0x18f   : > { %s3407_s20 = scalar_lea.vmem %s3406_s10, %s3405_s1 }
 0x190   : > { %1194 = vmatpush.bf16.msra.mxu0 %v2198_v34  ;;  %v2339_v51 = vld [vmem:[%s3407_s20] ss:$0 sm:$0xff]  ;;  %s3413_s20 = scalar_lea.vmem %s3412_s14, %s2882_s7 }
 0x193   : > { %2133 = vmatmul.msk.bf16.vlgmr.msra.gmra.mxu0 %vm1183_vm5, %v1166_v36  ;;  %v2201_v14 = vld [vmem:[%s3408_s23 + $0x8] sm:$0xff]  ;;  %v2200_v15 = vld [vmem:[%s3408_s23] sm:$0xff] }
 0x194   : > { %1353 = vmatpush.bf16.msrb.mxu0 %v2201_v14 }
 0x198   : > { %1354 = vmatpush.bf16.msrb.mxu0 %v2200_v15 }
 0x210   : > { %v1196_v38 = vpop.f32.mrf.mxu0 }
 0x211   : > { %v1197_v39 = vadd.f32 %v2338_v37, %v1196_v38 }
 0x213   : > { %v1200_v40 = vpack.c.bf16 %v1197_v39, %v1197_v39 }
 0x215   : > { %1262 = vrot.lane.b32.xlu1 %v1200_v40, %s2590_s9  ;;  %1205 = vrot.lane.b32.xlu0 %v1200_v40, %s2591_s27  ;;  %s2595_s9 = smov 16  }
 0x218   : > { %v1198_v41 = vpop.f32.mrf.mxu0 }
 0x219   : > { %v2203_v41 = vld [vmem:[%s2927_s29 + $0x8] sm:$0xff] }
 0x21d   : > { %1264 = vrot.lane.b32.xlu0 %v1200_v40, %s2592_s2 }
 0x225   : > { %1240 = vrot.lane.b32.xlu0 %v1200_v40, %s2593_s5  ;;  %s3416_s5 = sld [smem:[#allocation19_spill]] }
 0x22b   : > { %p2173_p8 = scmp.ne.s32.totalorder %s3416_s5, 1 }
 0x22c   : > { %s3418_s22 = sld [smem:[#allocation54_spill]] (!%p2173_p8)  ;;  %s2599_s2 = smov (!%p2173_p8), 1  }
 0x22d   : > { %1297 = vrot.lane.b32.xlu0 %v1200_v40, %s2594_s4  ;;  %s3417_s4 = sld [smem:[#allocation53_spill]] (!%p2173_p8) }
 0x22e   : > { %s3421_s10 = sld [smem:[#allocation33_spill]] (!%p2173_p8) }
 0x22f   : > { %s3423_s27 = sld [smem:[#allocation58_spill]] (!%p2173_p8) }
 0x287   : > { %v1206_v42 = vpop.permute.xlu0 %1205  ;;  %v1263_v46 = vpop.permute.xlu1 %1262 }
 0x288   : > { %v1212_v43 = vsel %vm1207_vm6, %v1206_v42, 0  ;;  %v2202_v42 = vld [vmem:[%s2927_s29] sm:$0xff] }
 0x289   : > { %1221 = vmatpush.bf16.xpose.msra.mxu1 %v1212_v43 }
 0x28f   : > { %v1265_v44 = vpop.permute.xlu0 %1264 }
 0x290   : > { %2134 = vmatmul.msk.bf16.vlgmr.msra.gmra.mxu1 %vm1207_vm6, %v1200_v40  ;;  %v1270_v45 = vsel %vm1207_vm6, %v1265_v44, 0 }
 0x291   : > { %1279 = vmatpush.bf16.xpose.msra.mxu3 %v1270_v45  ;;  %1430 = vmatpush.bf16.msrb.mxu1 %v2203_v41 }
 0x295   : > { %1431 = vmatpush.bf16.msrb.mxu1 %v2202_v42 }
 0x297   : > { %v1241_v47 = vpop.permute.xlu0 %1240 }
 0x298   : > { %2136 = vmatmul.msk.bf16.vlgmr.msra.gmra.mxu3 %vm1207_vm6, %v1263_v46  ;;  %v1247_v48 = vsel %vm1245_vm7, %v1241_v47, 0 }
 0x299   : > { %1256 = vmatpush.bf16.msra.mxu2 %v1247_v48 }
 0x29f   : > { %v1298_v49 = vpop.permute.xlu0 %1297 }
 0x2a0   : > { %v1303_v50 = vsel %vm1245_vm7, %v1298_v49, 0 }
 0x2a1   : > { %1312 = vmatpush.bf16.msrb.mxu2 %v1303_v50 }
 0x30d   : > { %v1223_v52 = vpop.f32.mrf.mxu1 }
 0x30e   : > { %v1224_v53 = vadd.f32 %v2339_v51, %v1223_v52  ;;  %v2341_v52 = vld [vmem:[%s1079_s0] ss:$0 sm:$0xff]  ;;  %s3420_s0 = sld [smem:[#allocation55_spill]] (!%p2173_p8) }
 0x310   : > { %v1228_v54 = vsel %vm1227_vm8, %v1224_v53, -inf }
 0x311   : > { %1229 = vmax.xlane.f32.xlu1 %v1228_v54 }
 0x315   : > { %v1225_v55 = vpop.f32.mrf.mxu1 }
 0x316   : > { %v2342_v55 = vld [vmem:[%s1082_s19] ss:$0 sm:$0xff] }
 0x31b   : > { %v1281_v56 = vpop.f32.mrf.mxu3 }
 0x31c   : > { %v1282_v57 = vadd.f32 %v2339_v51, %v1281_v56 }
 0x31e   : > { %v1285_v58 = vsel %vm1227_vm8, %v1282_v57, -inf }
 0x31f   : > { %1286 = vmax.xlane.f32.xlu2 %v1285_v58 }
 0x323   : > { %v1283_v59 = vpop.f32.mrf.mxu3 }
 0x324   : > { %v2207_v59 = vld [vmem:[%s2937_s12 + $0x18] sm:$0xff] }
 0x325   : > { %1491 = vmatpush.bf16.msrb.mxu3 %v2207_v59 }
 0x384   : > { %v1230_v60 = vpop.xlane.xlu1 %1229 }
 0x385   : > { %v1231_v61 = vsub.f32 %v1224_v53, %v1230_v60  ;;  %v2206_v60 = vld [vmem:[%s2937_s12 + $0x10] sm:$0xff] }
 0x386   : > { %1492 = vmatpush.bf16.msrb.mxu3 %v2206_v60 }
 0x387   : > { %v1232_v62 = vmul.f32 1.442695, %v1231_v61  ;;  %v2205_v61 = vld [vmem:[%s2937_s12 + $0x8] sm:$0xff] }
 0x389   : > { %2347 = vpow2.f32 %v1232_v62  ;;  %v2204_v62 = vld [vmem:[%s2937_s12] sm:$0xff] }
 0x38a   : > { %1493 = vmatpush.bf16.msrb.mxu3 %v2205_v61 }
 0x38e   : > { %1494 = vmatpush.bf16.msrb.mxu3 %v2204_v62 }
 0x38f   : > { %v2348_v63 = vpop.eup %2347 }
 0x390   : > { %v1234_v0 = vsel %vm1227_vm8, %v2348_v63, 0.0 }
 0x391   : > { %1235 = vadd.xlane.f32.xlu2 %v1234_v0 }
 0x392   : > { %v1287_v1 = vpop.xlane.xlu2 %1286 }
 0x393   : > { %v1288_v2 = vsub.f32 %v1282_v57, %v1287_v1 }
 0x395   : > { %v1289_v3 = vmul.f32 1.442695, %v1288_v2 }
 0x397   : > { %2349 = vpow2.f32 %v1289_v3 }
 0x39d   : > { %v2350_v4 = vpop.eup %2349 }
 0x39e   : > { %v1291_v5 = vsel %vm1227_vm8, %v2350_v4, 0.0 }
 0x39f   : > { %1292 = vadd.xlane.f32.xlu2 %v1291_v5 }
 0x404   : > { %v1236_v6 = vpop.xlane.xlu2 %1235 }
 0x405   : > { %2351 = vrcp.f32 %v1236_v6 }
 0x40b   : > { %v2352_v7 = vpop.eup %2351 }
 0x40c   : > { %v1238_v8 = vmul.f32 %v2352_v7, %v2348_v63  ;;  %v2343_v63 = vld [vmem:[%s3413_s20] ss:$0 sm:$0xff]  ;;  %s3419_s20 = sld [smem:[#allocation57_spill]] (!%p2173_p8) }
 0x40e   : > { %v1239_v9 = vpack.c.bf16 %v1238_v8, %v1238_v8 }
 0x410   : > { %2135 = vmatmul.msk.bf16.vlgmr.msra.gmra.mxu2 %vm1227_vm8, %v1239_v9 }
 0x412   : > { %v1293_v10 = vpop.xlane.xlu2 %1292 }
 0x413   : > { %2353 = vrcp.f32 %v1293_v10 }
 0x414   : > { %2355 = vrcp.f32 %v2596_v29 }
 0x419   : > { %v2354_v11 = vpop.eup %2353 }
 0x41a   : > { %v1295_v12 = vmul.f32 %v2354_v11, %v2350_v4  ;;  %v2356_v30 = vpop.eup %2355 }
 0x41b   : > { %v1367_v31 = vmul.f32 32.0, %v2356_v30  ;;  %vm1371_vm9 = vweird.f32 %v2356_v30 }
 0x41c   : > { %v1296_v13 = vpack.c.bf16 %v1295_v12, %v1295_v12 }
 0x41d   : > { %v1368_v32 = vsub.f32 1.0, %v1367_v31 }
 0x41f   : > { %v1369_v33 = vmul.f32 %v2356_v30, %v1368_v32 }
 0x420   : > { %2137 = vmatmul.msk.bf16.vlgmr.msrb.gmra.mxu2 %vm1227_vm8, %v1296_v13  ;;  %v2344_v13 = vld [vmem:[%s1098_s30] ss:$0 sm:$0xff]  ;;  %s3422_s30 = sld [smem:[#allocation56_spill]] (!%p2173_p8) }
 0x421   : > { %v1370_v34 = vadd.f32 %v2356_v30, %v1369_v33 }
 0x423   : > { %v3013_v36 = vsel %vm1371_vm9, %v2356_v30, %v1370_v34 }
 0x493   : > { %v1258_v16 = vpop.f32.mrf.mxu2 }
 0x49b   : > { %v1260_v17 = vpop.f32.mrf.mxu2 }
 0x4a3   : > { %v1314_v18 = vpop.f32.mrf.mxu2 }
 0x4a4   : > { %1319 = vrot.lane.b32.xlu2 %v1314_v18, %s2595_s9  ;;  %s3415_s9 = scalar_lea.vmem %s3281_s17, %s2882_s7 }
 0x4a5   : > { %v2345_v33 = vld [vmem:[%s3415_s9] ss:$0 sm:$0xff] }
 0x4ab   : > { %v1316_v19 = vpop.f32.mrf.mxu2 }
 0x4fe   : > { %v1320_v20 = vpop.permute.xlu2 %1319 }
 0x4ff   : > { %v1322_v21 = vsel %vm1207_vm6, %v1258_v16, %v1320_v20 }
 0x500   : > { %v1327_v22 = vpack.c.bf16 %v1322_v21, %v1322_v21 }
 0x502   : > { %2146 = vmatmul.msk.bf16.vlgmr.msrb.gmra.mxu0 %vm1183_vm5, %v1327_v22 }
 0x57f   : > { %v1356_v24 = vpop.f32.mrf.mxu0 }
 0x580   : > { %v1357_v25 = vadd.f32 %v2340_v23, %v1356_v24 }
 0x582   : > { %v1360_v26 = vadd.f32 %v1357_v25, %v2977_v35 }
 0x584   : > { %v1363_v27 = vsel %vm1183_vm5, %v1360_v26, 0.0 }
 0x585   : > { %1364 = vadd.xlane.f32.xlu0 %v1363_v27 }
 0x587   : > { %v1358_v28 = vpop.f32.mrf.mxu0 }
 0x5f8   : > { %v1365_v37 = vpop.xlane.xlu0 %1364 }
 0x5f9   : > { %v1373_v38 = vmul.f32 %v3013_v36, %v1365_v37  ;;  %v2346_v37 = vld [vmem:[%s1104_s24] ss:$0 sm:$0xff] }
 0x5fb   : > { %v1374_v35 = vsub.f32 %v1360_v26, %v1373_v38 }
 0x5fd   : > { %v1375_v39 = vmul.f32 %v1374_v35, %v1374_v35 }
 0x5ff   : > { %v1376_v40 = vsel %vm1183_vm5, %v1375_v39, 0.0 }
 0x600   : > { %1377 = vadd.xlane.f32.xlu2 %v1376_v40 }
 0x673   : > { %v1378_v43 = vpop.xlane.xlu2 %1377 }
 0x674   : > { %v1379_v44 = vmul.f32 %v1378_v43, %v3013_v36 }
 0x676   : > { %v1380_v45 = vadd.f32 1e-12, %v1379_v44 }
 0x678   : > { %2357 = vrsqrt.f32 %v1380_v45  ;;  %vm1387_vm11 = vweird.f32 %v1380_v45 }
 0x67e   : > { %v2358_v46 = vpop.eup %2357 }
 0x67f   : > { %v1382_v47 = vmul.f32 %v2358_v46, %v1380_v45  ;;  %vm1388_vm10 = vweird.f32 %v2358_v46 }
 0x680   : > { %vm1389_vm12 = vmor %vm1387_vm11, %vm1388_vm10 }
 0x681   : > { %v1383_v48 = vmul.f32 %v2358_v46, %v1382_v47 }
 0x683   : > { %v1384_v49 = vmul.f32 0.5, %v1383_v48 }
 0x685   : > { %v1385_v50 = vsub.f32 1.5, %v1384_v49 }
 0x687   : > { %v1386_v51 = vmul.f32 %v2358_v46, %v1385_v50 }
 0x689   : > { %v1390_v53 = vsel %vm1389_vm12, %v2358_v46, %v1386_v51 }
 0x68a   : > { %v1391_v54 = vmul.f32 %v1390_v53, %v1374_v35 }
 0x68c   : > { %v1395_v56 = vmul.f32 %v2341_v52, %v1391_v54 }
 0x68e   : > { %v1399_v57 = vadd.f32 %v2342_v55, %v1395_v56 }
 0x690   : > { %v1404_v58 = vpack.c.bf16 %v1399_v57, %v1399_v57 }
 0x692   : > { %2155 = vmatmul.msk.bf16.vlgmr.msrb.gmra.mxu1 %vm1183_vm5, %v1404_v58 }
 0x70f   : > { %v1433_v0 = vpop.f32.mrf.mxu1 }
 0x710   : > { %v1434_v1 = vadd.f32 %v2343_v63, %v1433_v0 }
 0x712   : > { %v1438_v2 = vmul.f32 0.044715, %v1434_v1  ;;  %v1437_v9 = vmul.f32 0.5, %v1434_v1 }
 0x714   : > { %v1439_v3 = vmul.f32 %v1438_v2, %v1434_v1 }
 0x716   : > { %v1440_v4 = vmul.f32 %v1439_v3, %v1434_v1 }
 0x717   : > { %v1435_v5 = vpop.f32.mrf.mxu1 }
 0x718   : > { %v1441_v6 = vadd.f32 %v1440_v4, %v1434_v1 }
 0x71a   : > { %v1442_v7 = vmul.f32 0.7978846, %v1441_v6 }
 0x71c   : > { %2359 = vtanh.f32 %v1442_v7 }
 0x722   : > { %v2360_v8 = vpop.eup %2359 }
 0x723   : > { %v1444_v10 = vadd.f32 1.0, %v2360_v8 }
 0x725   : > { %v1445_v11 = vmul.f32 %v1444_v10, %v1437_v9 }
 0x727   : > { %v1454_v12 = vpack.c.bf16 %v1445_v11, %v1445_v11 }
 0x729   : > { %2172 = vmatmul.msk.bf16.vlgmr.msrb.gmra.mxu3 %vm1483_vm13, %v1454_v12 }
 0x7ac   : > { %v1496_v14 = vpop.f32.mrf.mxu3 }
 0x7ad   : > { %v1497_v15 = vadd.f32 %v2344_v13, %v1496_v14 }
 0x7af   : > { %v1500_v16 = vadd.f32 %v1497_v15, %v1399_v57 }
 0x7b1   : > { %v1503_v17 = vsel %vm1183_vm5, %v1500_v16, 0.0 }
 0x7b2   : > { %1504 = vadd.xlane.f32.xlu1 %v1503_v17 }
 0x7b4   : > { %v1498_v18 = vpop.f32.mrf.mxu3 }
 0x825   : > { %v1505_v19 = vpop.xlane.xlu1 %1504 }
 0x826   : > { %v1506_v20 = vmul.f32 %v1505_v19, %v3013_v36 }
 0x828   : > { %v1507_v21 = vsub.f32 %v1500_v16, %v1506_v20 }
 0x82a   : > { %v1508_v22 = vmul.f32 %v1507_v21, %v1507_v21 }
 0x82c   : > { %v1509_v23 = vsel %vm1183_vm5, %v1508_v22, 0.0 }
 0x82d   : > { %1510 = vadd.xlane.f32.xlu1 %v1509_v23 }
 0x8a0   : > { %v1511_v24 = vpop.xlane.xlu1 %1510 }
 0x8a1   : > { %v1512_v25 = vmul.f32 %v1511_v24, %v3013_v36 }
 0x8a3   : > { %v1513_v26 = vadd.f32 1e-12, %v1512_v25 }
 0x8a5   : > { %2361 = vrsqrt.f32 %v1513_v26  ;;  %vm1520_vm15 = vweird.f32 %v1513_v26 }
 0x8ab   : > { %v2362_v27 = vpop.eup %2361 }
 0x8ac   : > { %v1515_v28 = vmul.f32 %v2362_v27, %v1513_v26  ;;  %vm1521_vm14 = vweird.f32 %v2362_v27 }
 0x8ad   : > { %vm1522_vm0 = vmor %vm1520_vm15, %vm1521_vm14 }
 0x8ae   : > { %v1516_v29 = vmul.f32 %v2362_v27, %v1515_v28 }
 0x8b0   : > { %v1517_v30 = vmul.f32 0.5, %v1516_v29 }
 0x8b2   : > { %v1518_v31 = vsub.f32 1.5, %v1517_v30 }
 0x8b4   : > { %v1519_v32 = vmul.f32 %v2362_v27, %v1518_v31 }
 0x8b6   : > { %v1523_v34 = vsel %vm1522_vm0, %v2362_v27, %v1519_v32 }
 0x8b7   : > { %v1524_v38 = vmul.f32 %v1523_v34, %v1507_v21 }
 0x8b9   : > { %v1528_v35 = vmul.f32 %v2345_v33, %v1524_v38 }
 0x8ba   : > { %1538 = sbr.rel (%p2173_p8) target bundleno = 3071 (0xbff), region = 128 }
 0x8bb   : > { %v1532_v39 = vadd.f32 %v2346_v37, %v1528_v35 }
 0x8bd   : > { %1533 = vst.msk [vmem:[#allocation2] sm:$0xff] %vm1183_vm5, %v1532_v39 }
 0x8be   : > { %1534 = vst.msk [vmem:[%s3325_s21] sm:$0xff] %vm1183_vm5, %v1532_v39 }
 0x8bf   : > { %v2209_v40 = vld [vmem:[%s3417_s4 + $0x8] sm:$0xff]  ;;  %v2208_v41 = vld [vmem:[%s3417_s4] sm:$0xff]  ;;  %v1543_v42 = vpack.c.bf16 %v1532_v39, %v1532_v39  ;;  %v1632_v57 = vld [vmem:[%s3419_s20 + $0x70] sm:$0xff]  ;;  %vm1717_vm7 = vcmask 7168   ;;  %vm1719_vm8 = vcmask 15360   ;;  %vm1727_vm9 = vcmask 8192  }
 0x8c0   : > { %1569 = vmatpush.bf16.msra.mxu0 %v2209_v40  ;;  %v2365_v43 = vld [vmem:[%s3418_s22] ss:$0 sm:$0xff]  ;;  %v1633_v58 = vld [vmem:[%s3419_s20 + $0x78] sm:$0xff]  ;;  %v1631_v61 = vld [vmem:[%s3419_s20 + $0x68] sm:$0xff] }
 0x8c1   : > { %v1641_v59 = vpack.c.bf16 %v1633_v58, %v1632_v57  ;;  %v1630_v60 = vld [vmem:[%s3419_s20 + $0x60] sm:$0xff]  ;;  %v1628_v1 = vld [vmem:[%s3419_s20 + $0x50] sm:$0xff]  ;;  %v1629_v2 = vld [vmem:[%s3419_s20 + $0x58] sm:$0xff] }
 0x8c2   : > { %v1640_v63 = vpack.c.bf16 %v1631_v61, %v1630_v60  ;;  %v1639_v3 = vpack.c.bf16 %v1629_v2, %v1628_v1  ;;  %v1626_v5 = vld [vmem:[%s3419_s20 + $0x40] sm:$0xff]  ;;  %v1627_v6 = vld [vmem:[%s3419_s20 + $0x48] sm:$0xff]  ;;  %v1624_v11 = vld [vmem:[%s3419_s20 + $0x30] sm:$0xff] }
 0x8c3   : > { %v1671_v62 = vsel %vm1183_vm5, %v1641_v59, 0  ;;  %v1638_v7 = vpack.c.bf16 %v1627_v6, %v1626_v5  ;;  %v1625_v12 = vld [vmem:[%s3419_s20 + $0x38] sm:$0xff]  ;;  %v1622_v18 = vld [vmem:[%s3419_s20 + $0x20] sm:$0xff]  ;;  %v1623_v19 = vld [vmem:[%s3419_s20 + $0x28] sm:$0xff]  ;;  %v1702_v59 = vlaneseq }
 0x8c4   : > { %1570 = vmatpush.bf16.msra.mxu0 %v2208_v41  ;;  %1673 = vmatpush.bf16.xpose.msra.mxu1 %v1671_v62  ;;  %v1668_v0 = vsel %vm1183_vm5, %v1640_v63, 0  ;;  %v1665_v4 = vsel %vm1183_vm5, %v1639_v3, 0  ;;  %v1637_v15 = vpack.c.bf16 %v1625_v12, %v1624_v11  ;;  %v1636_v20 = vpack.c.bf16 %v1623_v19, %v1622_v18  ;;  %v1620_v22 = vld [vmem:[%s3419_s20 + $0x10] sm:$0xff]  ;;  %v1621_v23 = vld [vmem:[%s3419_s20 + $0x18] sm:$0xff]  ;;  %v1618_v26 = vld [vmem:[%s3419_s20] sm:$0xff] }
 0x8c5   : > { %v1662_v10 = vsel %vm1183_vm5, %v1638_v7, 0  ;;  %v1635_v24 = vpack.c.bf16 %v1621_v23, %v1620_v22  ;;  %v1619_v27 = vld [vmem:[%s3419_s20 + $0x8] sm:$0xff]  ;;  %v2366_v40 = vld [vmem:[%s3420_s0] ss:$0 sm:$0xff]  ;;  %v1703_v60 = vand.u32 127, %v1702_v59 }
 0x8c6   : > { %v1659_v17 = vsel %vm1183_vm5, %v1637_v15, 0  ;;  %v1656_v21 = vsel %vm1183_vm5, %v1636_v20, 0  ;;  %v1634_v28 = vpack.c.bf16 %v1619_v27, %v1618_v26 }
 0x8c7   : > { %2182 = vmatmul.msk.bf16.vlgmr.msra.gmra.mxu0 %vm1183_vm5, %v1543_v42  ;;  %v1653_v25 = vsel %vm1183_vm5, %v1635_v24, 0 }
 0x8c8   : > { %v1650_v29 = vsel %vm1183_vm5, %v1634_v28, 0 }
 0x8cc   : > { %1674 = vmatpush.bf16.xpose.msra.mxu1 %v1668_v0 }
 0x8d4   : > { %1675 = vmatpush.bf16.xpose.msra.mxu1 %v1665_v4 }
 0x8dc   : > { %1676 = vmatpush.bf16.xpose.msra.mxu1 %v1662_v10 }
 0x8e4   : > { %1677 = vmatpush.bf16.xpose.msra.mxu1 %v1659_v17 }
 0x8ec   : > { %1678 = vmatpush.bf16.xpose.msra.mxu1 %v1656_v21 }
 0x8f4   : > { %1679 = vmatpush.bf16.xpose.msra.mxu1 %v1653_v25 }
 0x8fc   : > { %1680 = vmatpush.bf16.xpose.msra.mxu1 %v1650_v29 }
 0x944   : > { %v1572_v44 = vpop.f32.mrf.mxu0 }
 0x945   : > { %v1573_v45 = vadd.f32 %v2365_v43, %v1572_v44 }
 0x947   : > { %v1577_v46 = vmul.f32 0.044715, %v1573_v45  ;;  %v1576_v53 = vmul.f32 0.5, %v1573_v45 }
 0x949   : > { %v1578_v47 = vmul.f32 %v1577_v46, %v1573_v45  ;;  %v2597_v46 = vmov 0  }
 0x94a   : > { %2363 = vset.pattern.permute.xlu1 %v2597_v46  ;;  %2364 = vset.pattern.permute.xlu0 %v2597_v46 }
 0x94b   : > { %v1579_v48 = vmul.f32 %v1578_v47, %v1573_v45  ;;  %v2368_v47 = vld [vmem:[%s3423_s27] ss:$0 sm:$0xff] }
 0x94c   : > { %v1574_v49 = vpop.f32.mrf.mxu0 }
 0x94d   : > { %v1580_v50 = vadd.f32 %v1579_v48, %v1573_v45 }
 0x94f   : > { %v1581_v51 = vmul.f32 0.7978846, %v1580_v50 }
 0x951   : > { %2369 = vtanh.f32 %v1581_v51  ;;  %v1687_v51 = vld [vmem:[%s3421_s10] sm:$0xff] }
 0x952   : > { %vm1691_vm4 = vcmp.eq.s32.totalorder %v1687_v51, 4294967196  ;;  %vm1688_vm6 = vcmp.ne.s32.totalorder %v1687_v51, 4294967196 }
 0x957   : > { %v2370_v52 = vpop.eup %2369 }
 0x958   : > { %v1583_v54 = vadd.f32 1.0, %v2370_v52  ;;  %v1692_v52 = vsel %vm1691_vm4, 0, %v1687_v51 }
 0x95a   : > { %v1584_v55 = vmul.f32 %v1583_v54, %v1576_v53  ;;  %v2598_v53 = vmov 0.0  }
 0x95b   : > { %v2184_v54 = vsel %vm1688_vm6, 1.0, %v2598_v53 }
 0x95c   : > { %v1587_v56 = vsel %vm1183_vm5, %v1584_v55, 0.0 }
 0x95d   : > { %1588 = vadd.xlane.f32.xlu0 %v1587_v56 }
 0x9d0   : > { %v1589_v8 = vpop.xlane.xlu0 %1588 }
 0x9d1   : > { %v1590_v9 = vmul.f32 %v1589_v8, %v3013_v36 }
 0x9d3   : > { %v1591_v13 = vsub.f32 %v1584_v55, %v1590_v9 }
 0x9d5   : > { %v1592_v14 = vmul.f32 %v1591_v13, %v1591_v13 }
 0x9d7   : > { %v1593_v16 = vsel %vm1183_vm5, %v1592_v14, 0.0 }
 0x9d8   : > { %1594 = vadd.xlane.f32.xlu0 %v1593_v16 }
 0x9ec   : > { %1714 = vrot.lane.b32.xlu0 %v2184_v54, %s2599_s2 }
 0xa4b   : > { %v1595_v30 = vpop.xlane.xlu0 %1594 }
 0xa4c   : > { %v1596_v31 = vmul.f32 %v1595_v30, %v3013_v36  ;;  %v2367_v36 = vld [vmem:[%s3422_s30] ss:$0 sm:$0xff] }
 0xa4e   : > { %v1597_v32 = vadd.f32 1e-12, %v1596_v31 }
 0xa50   : > { %2371 = vrsqrt.f32 %v1597_v32  ;;  %vm1604_vm2 = vweird.f32 %v1597_v32 }
 0xa56   : > { %v2372_v33 = vpop.eup %2371 }
 0xa57   : > { %v1599_v34 = vmul.f32 %v2372_v33, %v1597_v32  ;;  %vm1605_vm1 = vweird.f32 %v2372_v33 }
 0xa58   : > { %vm1606_vm3 = vmor %vm1604_vm2, %vm1605_vm1 }
 0xa59   : > { %v1600_v37 = vmul.f32 %v2372_v33, %v1599_v34 }
 0xa5b   : > { %v1601_v38 = vmul.f32 0.5, %v1600_v37 }
 0xa5d   : > { %v1602_v35 = vsub.f32 1.5, %v1601_v38 }
 0xa5e   : > { %v1715_v4 = vpop.permute.xlu0 %1714 }
 0xa5f   : > { %v1603_v39 = vmul.f32 %v2372_v33, %v1602_v35 }
 0xa61   : > { %v1607_v41 = vsel %vm1606_vm3, %v2372_v33, %v1603_v39 }
 0xa62   : > { %v1608_v42 = vmul.f32 %v1607_v41, %v1591_v13 }
 0xa64   : > { %v1612_v43 = vmul.f32 %v2366_v40, %v1608_v42 }
 0xa66   : > { %v1616_v44 = vadd.f32 %v2367_v36, %v1612_v43 }
 0xa68   : > { %v1617_v45 = vpack.c.bf16 %v1616_v44, %v1616_v44 }
 0xa6a   : > { %2183 = vmatmul.msk.bf16.vlgmr.msra.gmra.mxu1 %vm1183_vm5, %v1617_v45 }
 0xae7   : > { %v1682_v48 = vpop.f32.mrf.mxu1 }
 0xae8   : > { %v1683_v49 = vadd.f32 %v2368_v47, %v1682_v48 }
 0xaea   : > { %1686 = vst [vmem:[%s2951_s3] sm:$0xff] %v1683_v49  ;;  %1693 = vmax.xlane.f32.xlu1 %v1683_v49 }
 0xaef   : > { %v1684_v50 = vpop.f32.mrf.mxu1 }
 0xb03   : > { %1705 = vperm.xlu1 %2363, %v1692_v52  }
 0xb5d   : > { %v1694_v55 = vpop.xlane.xlu1 %1693 }
 0xb5e   : > { %v1695_v56 = vsub.f32 %v1683_v49, %v1694_v55 }
 0xb60   : > { %v1696_v57 = vmul.f32 1.442695, %v1695_v56 }
 0xb62   : > { %2373 = vpow2.f32 %v1696_v57 }
 0xb68   : > { %v2374_v58 = vpop.eup %2373 }
 0xb69   : > { %1698 = vadd.xlane.f32.xlu2 %v2374_v58 }
 0xb75   : > { %v1706_v61 = vpop.permute.xlu1 %1705 }
 0xb76   : > { %vm1707_vm5 = vcmp.eq.s32.totalorder %v1703_v60, %v1706_v61 }
 0xb77   : > { %v1708_v62 = vsel %vm1707_vm5, %v1695_v56, 0.0 }
 0xb78   : > { %1709 = vadd.xlane.f32.xlu2 %v1708_v62 }
 0xbdc   : > { %v1699_v63 = vpop.xlane.xlu2 %1698 }
 0xbdd   : > { %2375 = vlog2.f32 %v1699_v63 }
 0xbe3   : > { %v2376_v0 = vpop.eup %2375 }
 0xbe4   : > { %v1701_v1 = vmul.f32 0.6931472, %v2376_v0 }
 0xbeb   : > { %v1710_v2 = vpop.xlane.xlu2 %1709 }
 0xbec   : > { %v1711_v3 = vsub.f32 %v1701_v1, %v1710_v2 }
 0xbee   : > { %v1712_v5 = vmul.f32 %v2184_v54, %v1711_v3 }
 0xbf0   : > { %v1718_v6 = vsel %vm1717_vm7, %v1712_v5, %v1715_v4 }
 0xbf1   : > { %v1720_v7 = vsel %vm1719_vm8, %v1718_v6, 0.0 }
 0xbf2   : > { %v1721_v8 = vrot.slane %v1720_v7, 4 }
 0xbf4   : > { %v1722_v9 = vadd.f32 %v1721_v8, %v1720_v7 }
 0xbf6   : > { %v1723_v10 = vrot.slane %v1722_v9, 2 }
 0xbf8   : > { %v1724_v11 = vadd.f32 %v1723_v10, %v1722_v9 }
 0xbfa   : > { %v1725_v12 = vrot.slane %v1724_v11, 1 }
 0xbfc   : > { %v1726_v13 = vadd.f32 %v1725_v12, %v1724_v11 }
 0xbfe   : > { %1728 = vst.msk [vmem:[%s1035_s6] sm:$0x1] %vm1727_vm9, %v1726_v13 }
 0xbff PF: > { %s3424_s5 = sld [smem:[#allocation23_spill]]  ;;  %s1769_s10 = sshll.u32 %s1035_s6, 4  ;;  %s1770_s10 = int_to_ptr.vmem [resolvable:$true] %s1769_s10 }
 0xc00   : > { %s3426_s25 = sld [smem:[#allocation20_spill]] }
 0xc01   : > { %s3428_s22 = sld [smem:[#allocation60_spill]] }
 0xc05   : > { %s3425_s29 = sadd.s32 4294967295, %s3424_s5  }
 0xc06   : > { %s3150_s8 = sand.u32 1, %s3425_s29  }
 0xc07   : > { %s1767_s0 = scalar_lea.hbm %s3428_s22, %s3426_s25  ;;  %s1735_s12 = scalar_lea.sflag [#allocation6], %s3150_s8 }
 0xc08   : > { %s1771_s19 = sshll.u32 %s1767_s0, 4  ;;  %s2397_s2 = scalar_lea.hbm %s3428_s22, 2  ;;  %s1772_s19 = int_to_ptr.hbm [resolvable:$true] %s1771_s19 }
 0xc09   : > { %s2391_s30 = sshra.s32 %s1772_s19, 4  ;;  %s2392_s30 = int_to_ptr.hbm [resolvable:$true] %s2391_s30 }
 0xc0a   : > { %s2393_s23 = scalar_lea.hbm %s2392_s30, 1  ;;  %p2398_p0 = scmp.lt.s32.totalorder %s2392_s30, %s3428_s22 }
 0xc0b   : > { %p2394_p9 = scmp.ne.s32.totalorder %s2392_s30, %s2393_s23  ;;  %p2399_p1 = scmp.lt.s32.totalorder %s2397_s2, %s2393_s23 }
 0xc0d   : > { %p2395_p10 = pnand %p2394_p9, %p2818_p3  ;;  %p2400_p4 = por %p2399_p1, %p2398_p0 }
 0xc0f   : > { %p2396_p11 = pneg %p2395_p10 }
 0xc11   : > { %p2401_p2 = pnand %p2400_p4, %p2396_p11 }
 0xc13   : > { %2404 = shalt.err (!%p2401_p2)
}
 0xc14   : > { %2211 = dma.vmem_to_hbm [thread:$0]  (%p2818_p3), %s1770_s10, 16, %s1772_s19, %s1735_s12  }
 0xc15   : > { %s2188_s6 = sshll.u32 %s3426_s25, 3  ;;  %s1756_s7 = sshll.u32 %s2951_s3, 4  ;;  %s1757_s7 = int_to_ptr.vmem [resolvable:$true] %s1756_s7 }
 0xc16   : > { %s3429_s9 = sld [smem:[#allocation59_spill]]  ;;  %s1783_s13 = sshll.u32 %s2954_s11, 4  ;;  %s1784_s13 = int_to_ptr.vmem [resolvable:$true] %s1783_s13 }
 0xc17   : > { %s3431_s29 = sld [smem:[#allocation61_spill]]  ;;  %s1730_s14 = scalar_lea.sflag [#allocation4], %s2868_s26 }
 0xc1c   : > { %s3430_s27 = smov %s3429_s9  ;;  %s1754_s30 = scalar_lea.hbm %s3429_s9, %s2188_s6 }
 0xc1d   : > { %s1758_s23 = sshll.u32 %s1754_s30, 4  ;;  %s3432_s21 = smov %s3431_s29  ;;  %s1759_s23 = int_to_ptr.hbm [resolvable:$true] %s1758_s23 }
 0xc1e   : > { %s1781_s4 = scalar_lea.hbm %s3431_s29, %s2188_s6  ;;  %s2419_s15 = sshra.s32 %s1759_s23, 4  ;;  %s2420_s15 = int_to_ptr.hbm [resolvable:$true] %s2419_s15 }
 0xc1f   : > { %s2421_s16 = scalar_lea.hbm %s2420_s15, 8  ;;  %s2425_s19 = scalar_lea.hbm %s3430_s27, 16 }
 0xc20   : > { %p2422_p5 = scmp.ne.s32.totalorder %s2420_s15, %s2421_s16  ;;  %p2426_p9 = scmp.lt.s32.totalorder %s2420_s15, %s3430_s27 }
 0xc21   : > { %p2427_p10 = scmp.lt.s32.totalorder %s2425_s19, %s2421_s16 }
 0xc22   : > { %p2423_p6 = pnand %p2422_p5, %p2818_p3 }
 0xc23   : > { %p2428_p11 = por %p2427_p10, %p2426_p9 }
 0xc24   : > { %p2424_p8 = pneg %p2423_p6 }
 0xc26   : > { %p2429_p0 = pnand %p2428_p11, %p2424_p8 }
 0xc28   : > { %2432 = shalt.err (!%p2429_p0)
}
 0xc29   : > { %2210 = dma.vmem_to_hbm [thread:$0]  (%p2818_p3), %s1757_s7, 128, %s1759_s23, %s1730_s14  }
 0xc2a   : > { %s1785_s26 = sshll.u32 %s1781_s4, 4  ;;  %s2453_s16 = scalar_lea.hbm %s3432_s21, 16  ;;  %s1786_s26 = int_to_ptr.hbm [resolvable:$true] %s1785_s26 }
 0xc2b   : > { %s2447_s11 = sshra.s32 %s1786_s26, 4  ;;  %s2448_s11 = int_to_ptr.hbm [resolvable:$true] %s2447_s11 }
 0xc2c   : > { %s2449_s6 = scalar_lea.hbm %s2448_s11, 8  ;;  %p2454_p5 = scmp.lt.s32.totalorder %s2448_s11, %s3432_s21 }
 0xc2d   : > { %p2450_p1 = scmp.ne.s32.totalorder %s2448_s11, %s2449_s6  ;;  %p2455_p6 = scmp.lt.s32.totalorder %s2453_s16, %s2449_s6 }
 0xc2f   : > { %p2451_p4 = pnand %p2450_p1, %p2818_p3  ;;  %p2456_p8 = por %p2455_p6, %p2454_p5 }
 0xc31   : > { %p2452_p2 = pneg %p2451_p4 }
 0xc33   : > { %p2457_p9 = pnand %p2456_p8, %p2452_p2 }
 0xc35   : > { %2460 = shalt.err (!%p2457_p9)
}
 0xc36   : > { %s3433_s14 = sld [smem:[#allocation19_spill]]  ;;  %s3436_s5 = scalar_lea.vmem [#allocation8], %s2874_s28 }
 0xc37   : > { %s3434_s4 = sld [smem:[#allocation14_spill]]  ;;  %s1799_s29 = sshll.u32 %s3436_s5, 4  ;;  %s1800_s29 = int_to_ptr.vmem [resolvable:$true] %s1799_s29 }
 0xc38   : > { %2212 = dma.vmem_to_hbm [thread:$0]  (%p2818_p3), %s1784_s13, 128, %s1786_s26, %s1735_s12  }
 0xc39   : > { %s3437_s0 = sld [smem:[#allocation62_spill]] }
 0xc3c   : > { %s2190_s23 = sshll.u32 %s3433_s14, 1 }
 0xc3d   : > { %s1795_s3 = sadd.s32 %s3426_s25, %s2190_s23  ;;  %s3439_s1 = sand.u32 1, %s3434_s4  }
 0xc3e   : > { %s2191_s10 = sshll.u32 %s1795_s3, 3  ;;  %s1744_s8 = scalar_lea.sflag [#allocation9], %s3439_s1 }
 0xc3f   : > { %s3438_s15 = smov %s3437_s0  ;;  %s1797_s11 = scalar_lea.hbm %s3437_s0, %s2191_s10 }
 0xc40   : > { %s1801_s6 = sshll.u32 %s1797_s11, 4  ;;  %s2481_s25 = scalar_lea.hbm %s3438_s15, 32  ;;  %s1802_s6 = int_to_ptr.hbm [resolvable:$true] %s1801_s6 }
 0xc41   : > { %s2475_s9 = sshra.s32 %s1802_s6, 4  ;;  %s2476_s9 = int_to_ptr.hbm [resolvable:$true] %s2475_s9 }
 0xc42   : > { %s2477_s16 = scalar_lea.hbm %s2476_s9, 8  ;;  %p2482_p0 = scmp.lt.s32.totalorder %s2476_s9, %s3438_s15 }
 0xc43   : > { %p2478_p10 = scmp.ne.s32.totalorder %s2476_s9, %s2477_s16  ;;  %p2483_p1 = scmp.lt.s32.totalorder %s2481_s25, %s2477_s16 }
 0xc45   : > { %p2479_p3 = pnand %p2478_p10, %p2849_p12  ;;  %p2484_p4 = por %p2483_p1, %p2482_p0 }
 0xc47   : > { %p2480_p11 = pneg %p2479_p3 }
 0xc49   : > { %p2485_p2 = pnand %p2484_p4, %p2480_p11 }
 0xc4b   : > { %2488 = shalt.err (!%p2485_p2)
}
 0xc4c   : > { %2213 = dma.vmem_to_hbm [thread:$0]  (%p2849_p12), %s1800_s29, 128, %s1802_s6, %s1744_s8  }
 0xc4d PF: > { %s3440_s30 = sld [smem:[#allocation23_spill]] }
 0xc4e   : > { %s3441_s2 = sld [smem:[#allocation16_spill]] }
 0xc53   : > { %p2231_p5 = scmp.ge.s32.totalorder %s3440_s30, 2 }
 0xc54   : > { %s1813_s4 = sand.u32 1, %s3441_s2  }
 0xc55   : > { %p2219_p6 = pnand %p2231_p5, %p2837_p7  ;;  %s1814_s23 = scalar_lea.sflag [#allocation4], %s1813_s4 }
 0xc57   : > { %p2220_p8 = pneg %p2219_p6 }
 0xc59   : > { %2534 = dma.done.wait (%p2220_p8), %s1814_s23, 128  }
 0xc5a   : > { %2536 = vsyncadd (%p2220_p8), %s1814_s23, 4294967168  ;;  %s3443_s5 = sadd.s32 4294967294, %s3440_s30  }
 0xc5b   : > { %s1823_s3 = sand.u32 1, %s3443_s5  }
 0xc5c   : > { %s1824_s10 = scalar_lea.sflag [#allocation6], %s1823_s3 }
 0xc5d   : > { %2538 = dma.done.wait (%p2220_p8), %s1824_s10, 144  }
 0xc5e   : > { %2540 = vsyncadd (%p2220_p8), %s1824_s10, 4294967152  ;;  %s3444_s7 = sld [smem:[#allocation13_spill]]  ;;  %p2228_p12 = pnand %p2231_p5, %p2861_p13 }
 0xc60   : > { %p2229_p9 = pneg %p2228_p12 }
 0xc64   : > { %s1842_s19 = sand.u32 1, %s3444_s7  }
 0xc65   : > { %s1843_s24 = scalar_lea.sflag [#allocation9], %s1842_s19 }
 0xc66   : > { %2542 = dma.done.wait (%p2229_p9), %s1843_s24, 128  }
 0xc67   : > { %2544 = vsyncadd (%p2229_p9), %s1843_s24, 4294967168  ;;  %s48_s2 = sadd.s32 1, %s3440_s30   ;;  %s3446_s8 = sld [smem:[#allocation14_spill]] }
 0xc68   : > { %p45_p7 = scmp.ge.s32.totalorder %s48_s2, 6   ;;  %s3447_s5 = sld [smem:[#allocation15_spill]] }
 0xc69   : > { %s3448_s9 = sld [smem:[#allocation30_spill]] }
 0xc6a   : > { %s3449_s30 = sld [smem:[#allocation17_spill]] }
 0xc6b   : > { %s3450_s3 = sld [smem:[#allocation18_spill]] }
 0xc6c   : > { %s3451_s6 = sld [smem:[#allocation29_spill]]  ;;  %47 = sbr.rel (!%p45_p7) target bundleno = 39 (0x27), region = 254 }
 0xc6d   : > { %s3452_s10 = sld [smem:[#allocation21_spill]] }
 0xc6e   : > { %s3453_s0 = sld [smem:[#allocation22_spill]] }
 0xc6f   : > { %s3454_s11 = sld [smem:[#allocation24_spill]] }
 0xc70   : > { %s3455_s29 = sld [smem:[#allocation26_spill]] }
 0xc71   :  { %1849 = vsyncpa [#allocation4], 1 }
 0xc72   :  { %1851 = vsyncpa [#allocation4 + $0x1], 1 }
 0xc73   :  { %1852 = vsyncpa [#allocation6], 1 }
 0xc74   :  { %1854 = vsyncpa [#allocation6 + $0x1], 1 }
 0xc75   :  { %1855 = vsyncpa [#allocation9], 1 }
 0xc76   :  { %1857 = vsyncpa [#allocation9 + $0x1], 1 }

</bundles_post_ra>
